<compile_context>
chip_gen: v7x
topology: tpu7x:2x2x1
jax: 0.10.0
libtpu: 0.0.40
codegen_flags: <defaults>
</compile_context>

<pallas_src>
import functools

import jax
import jax.numpy as jnp
from jax import lax
from jax.experimental import pallas as pl
from jax.experimental.pallas import tpu as pltpu


def _fused_inv_res_kernel(x_ref, w1_ref, b1_ref, wd_ref, bd_ref, w2_ref, b2_ref,
                          o_ref, hp_ref, *, W, P, PAD0):
    # x_ref block: (1, P, Cin) for one batch element (P = H*W, NHWC-flattened).
    x2d = x_ref[0]                                            # (P, Cin) f32

    # ---- 1x1 expand conv (bf16 MXU, f32 accumulate) + folded BN + ReLU6 ----
    h1 = jnp.dot(x2d.astype(jnp.bfloat16), w1_ref[...],
                 preferred_element_type=jnp.float32)          # (P, Cmid_pad)
    h1 = jnp.clip(h1 + b1_ref[...], 0.0, 6.0)

    # ---- 3x3 depthwise conv via zero-bordered flat VMEM scratch ----
    # Scratch layout: [PAD0 zero rows | h1 rows (P) | PAD0 zero rows], so the
    # three row shifts (dy-1)*W are 8-aligned sublane offsets and row
    # out-of-bounds taps read zeros.  Column +/-1 taps additionally need a
    # column-validity mask (also covers the row-wrap corner cases).
    cpad = hp_ref.shape[1]
    zero_band = jnp.zeros((PAD0, cpad), jnp.float32)
    hp_ref[pl.ds(0, PAD0), :] = zero_band                     # top zero border
    hp_ref[pl.ds(PAD0 + P, PAD0), :] = zero_band              # bottom zero border
    hp_ref[pl.ds(PAD0, P), :] = h1                            # aligned interior

    col = lax.broadcasted_iota(jnp.int32, (P, 1), 0) % W
    ok_l = col >= 1                                           # column j-1 valid
    ok_r = col <= W - 2                                       # column j+1 valid

    wd = wd_ref[...]                                          # (9, Cmid_pad)
    acc = jnp.zeros_like(h1)                                  # f32 accumulator
    for dy in range(3):
        for dx in range(3):
            ox = dx - 1
            win = hp_ref[pl.ds(PAD0 + (dy - 1) * W + ox, P), :]
            if ox == -1:
                win = jnp.where(ok_l, win, 0.0)
            elif ox == 1:
                win = jnp.where(ok_r, win, 0.0)
            acc = acc + win * wd[dy * 3 + dx:dy * 3 + dx + 1, :]
    h2 = jnp.clip(acc + bd_ref[...], 0.0, 6.0)                # (P, Cmid_pad)

    # ---- 1x1 project conv (bf16 MXU) + folded BN + residual add ----
    proj = jnp.dot(h2.astype(jnp.bfloat16), w2_ref[...],
                   preferred_element_type=jnp.float32)        # (P, Cout)
    o_ref[0] = x2d + proj + b2_ref[...]


def fused_inverted_residual_nhwc(x_nhwc, w1, b1, wd9, bd, w2, b2):
    """NHWC entry point (preferred when embedding in a network).

    x_nhwc: (N, H, W, Cin).  BN-folded weights:
      w1 (Cin, Cmid), b1 (1, Cmid), wd9 (9, Cmid), bd (1, Cmid),
      w2 (Cmid, Cout), b2 (1, Cout).
    """
    N, H, W, Cin = x_nhwc.shape
    Cmid = w1.shape[1]
    Cout = w2.shape[1]
    assert Cin == Cout, "residual branch requires inp == oup"

    # Lane-dense internal channels: zero-pad Cmid up to a multiple of 128.
    cmid_pad = ((Cmid + 127) // 128) * 128
    pad = cmid_pad - Cmid
    w1p = jnp.pad(w1, ((0, 0), (0, pad))).astype(jnp.bfloat16)
    b1p = jnp.pad(b1, ((0, 0), (0, pad)))
    wdp = jnp.pad(wd9, ((0, 0), (0, pad)))
    bdp = jnp.pad(bd, ((0, 0), (0, pad)))
    w2p = jnp.pad(w2, ((0, pad), (0, 0))).astype(jnp.bfloat16)

    P = H * W
    pad0 = ((W + 8) // 8) * 8            # >= W + 1 and a multiple of 8
    rows = 2 * pad0 + P                  # scratch rows (zero borders + interior)

    x_flat = x_nhwc.reshape(N, P, Cin)   # free reshape (contiguous)

    kernel = functools.partial(_fused_inv_res_kernel, W=W, P=P, PAD0=pad0)

    flops = 2 * N * P * cmid_pad * (Cin + 9 + Cout)
    bytes_accessed = (x_flat.size * 4 + N * P * Cout * 4
                      + (w1p.size + w2p.size) * 2
                      + (b1p.size + wdp.size + bdp.size + b2.size) * 4)

    wspec = lambda shape: pl.BlockSpec(shape, lambda n: (0, 0))

    out = pl.pallas_call(
        kernel,
        out_shape=jax.ShapeDtypeStruct((N, P, Cout), jnp.float32),
        grid_spec=pltpu.PrefetchScalarGridSpec(
            num_scalar_prefetch=0,
            grid=(N,),
            in_specs=[
                pl.BlockSpec((1, P, Cin), lambda n: (n, 0, 0)),
                wspec(w1p.shape), wspec(b1p.shape),
                wspec(wdp.shape), wspec(bdp.shape),
                wspec(w2p.shape), wspec(b2.shape),
            ],
            out_specs=pl.BlockSpec((1, P, Cout), lambda n: (n, 0, 0)),
            scratch_shapes=[pltpu.VMEM((rows, cmid_pad), jnp.float32)],
        ),
        compiler_params=pltpu.CompilerParams(
            dimension_semantics=("parallel",)),
        cost_estimate=pl.CostEstimate(flops=flops, transcendentals=0,
                                      bytes_accessed=bytes_accessed),
    )(x_flat, w1p, b1p, wdp, bdp, w2p, b2)
    return out.reshape(N, H, W, Cout)


@jax.jit
def fused_inverted_residual(x_nchw, w1, b1, wd9, bd, w2, b2):
    """PyTorch-layout wrapper: (N, Cin, H, W) -> (N, Cout, H, W).
    Each transpose is a full HBM pass; prefer the NHWC entry point when the
    block is embedded in a network."""
    x = jnp.transpose(x_nchw, (0, 2, 3, 1))
    y = fused_inverted_residual_nhwc(x, w1, b1, wd9, bd, w2, b2)
    return jnp.transpose(y, (0, 3, 1, 2))


def _reference(x_nchw, w1, b1, wd9, bd, w2, b2):
    """Independent f32 check using lax convolutions (NHWC)."""
    Cmid = w1.shape[1]
    x = jnp.transpose(x_nchw, (0, 2, 3, 1))
    dn = ("NHWC", "HWIO", "NHWC")
    # 1x1 expand
    k1 = w1.reshape(1, 1, *w1.shape)                          # (1,1,Cin,Cmid)
    h1 = lax.conv_general_dilated(x, k1, (1, 1), "SAME", dimension_numbers=dn)
    h1 = jnp.clip(h1 + b1.reshape(1, 1, 1, -1), 0.0, 6.0)
    # depthwise 3x3
    kd = wd9.reshape(3, 3, 1, Cmid)                           # HWIO, groups=Cmid
    h2 = lax.conv_general_dilated(h1, kd, (1, 1), "SAME",
                                  dimension_numbers=dn,
                                  feature_group_count=Cmid)
    h2 = jnp.clip(h2 + bd.reshape(1, 1, 1, -1), 0.0, 6.0)
    # 1x1 project
    k2 = w2.reshape(1, 1, *w2.shape)
    y = lax.conv_general_dilated(h2, k2, (1, 1), "SAME", dimension_numbers=dn)
    y = y + b2.reshape(1, 1, 1, -1)
    out = x + y
    return jnp.transpose(out, (0, 3, 1, 2))


if __name__ == "__main__":
    N, Cin, H, W = 2, 32, 16, 16
    expand = 2
    Cmid, Cout = Cin * expand, Cin                            # stride=1, inp==oup -> residual
    eps = 1e-5

    key = jax.random.PRNGKey(0)
    ks = jax.random.split(key, 16)

    x = jax.random.normal(ks[0], (N, Cin, H, W), jnp.float32)

    # Raw PyTorch-shaped conv weights (no conv bias, as in MobileNetV2).
    w1_t = jax.random.normal(ks[1], (Cmid, Cin, 1, 1), jnp.float32) * 0.1
    wd_t = jax.random.normal(ks[2], (Cmid, 1, 3, 3), jnp.float32) * 0.1
    w2_t = jax.random.normal(ks[3], (Cout, Cmid, 1, 1), jnp.float32) * 0.1

    def bn_params(kg, kb, km, kv, C):
        gamma = 1.0 + 0.1 * jax.random.normal(kg, (C,), jnp.float32)
        beta = 0.1 * jax.random.normal(kb, (C,), jnp.float32)
        mean = 0.1 * jax.random.normal(km, (C,), jnp.float32)
        var = jax.random.uniform(kv, (C,), jnp.float32, 0.5, 1.5)
        scale = gamma / jnp.sqrt(var + eps)
        bias = beta - mean * scale
        return scale, bias

    s1, bb1 = bn_params(ks[4], ks[5], ks[6], ks[7], Cmid)
    sd, bbd = bn_params(ks[8], ks[9], ks[10], ks[11], Cmid)
    s2, bb2 = bn_params(ks[12], ks[13], ks[14], ks[15], Cout)

    # Fold BN into conv weights; reshape to kernel-friendly matrices.
    w1 = (w1_t[:, :, 0, 0] * s1[:, None]).T                   # (Cin, Cmid)
    b1 = bb1.reshape(1, Cmid)
    wd = jnp.transpose(wd_t[:, 0, :, :] * sd[:, None, None], (1, 2, 0))  # (3,3,Cmid)
    wd9 = wd.reshape(9, Cmid)
    bd = bbd.reshape(1, Cmid)
    w2 = (w2_t[:, :, 0, 0] * s2[:, None]).T                   # (Cmid, Cout)
    b2 = bb2.reshape(1, Cout)

    out = fused_inverted_residual(x, w1, b1, wd9, bd, w2, b2)
    out = jax.block_until_ready(out)

    ref = _reference(x, w1, b1, wd9, bd, w2, b2)
    assert out.shape == (N, Cout, H, W)
    # bf16 MXU operands (f32 accumulate) -> slightly relaxed tolerance vs the
    # all-f32 lax reference.
    assert jnp.allclose(out, ref, rtol=3e-2, atol=3e-2), "mismatch vs reference"
    print("KERNEL_OK")
</pallas_src>

<mosaic_0001>
module attributes {stable_mosaic.version = 11 : i64} {
  func.func @_fused_inv_res_kernel(%arg0: i32, %arg1: memref<1x256x32xf32, #tpu.memory_space<vmem>>, %arg2: memref<32x128xbf16, #tpu.memory_space<vmem>>, %arg3: memref<1x128xf32, #tpu.memory_space<vmem>>, %arg4: memref<9x128xf32, #tpu.memory_space<vmem>>, %arg5: memref<1x128xf32, #tpu.memory_space<vmem>>, %arg6: memref<128x32xbf16, #tpu.memory_space<vmem>>, %arg7: memref<1x32xf32, #tpu.memory_space<vmem>>, %arg8: memref<1x256x32xf32, #tpu.memory_space<vmem>>, %arg9: memref<304x128xf32, #tpu.memory_space<vmem>>) attributes {dimension_semantics = [#tpu.dimension_semantics<parallel>], iteration_bounds = array<i64: 2>, scalar_prefetch = 0 : i64, scratch_operands = 1 : i64, tpu.core_type = #tpu.core_type<tc>, window_params = [{transform_indices = @transform_0, window_bounds = array<i64: 1, 256, 32>}, {pipeline_mode = #tpu.pipeline_mode<synchronous>, transform_indices = @transform_1, window_bounds = array<i64: 32, 128>}, {pipeline_mode = #tpu.pipeline_mode<synchronous>, transform_indices = @transform_2, window_bounds = array<i64: 1, 128>}, {pipeline_mode = #tpu.pipeline_mode<synchronous>, transform_indices = @transform_3, window_bounds = array<i64: 9, 128>}, {pipeline_mode = #tpu.pipeline_mode<synchronous>, transform_indices = @transform_4, window_bounds = array<i64: 1, 128>}, {pipeline_mode = #tpu.pipeline_mode<synchronous>, transform_indices = @transform_5, window_bounds = array<i64: 128, 32>}, {pipeline_mode = #tpu.pipeline_mode<synchronous>, transform_indices = @transform_6, window_bounds = array<i64: 1, 32>}, {transform_indices = @transform_7, window_bounds = array<i64: 1, 256, 32>}]} {
    %c0 = arith.constant 0 : index
    %c0_0 = arith.constant 0 : index
    %c0_1 = arith.constant 0 : index
    %0 = vector.load %arg1[%c0, %c0_0, %c0_1] : memref<1x256x32xf32, #tpu.memory_space<vmem>>, vector<1x256x32xf32>
    %1 = vector.shape_cast %0 : vector<1x256x32xf32> to vector<256x32xf32>
    %2 = arith.truncf %1 : vector<256x32xf32> to vector<256x32xbf16>
    %c0_2 = arith.constant 0 : index
    %c0_3 = arith.constant 0 : index
    %3 = vector.load %arg2[%c0_2, %c0_3] : memref<32x128xbf16, #tpu.memory_space<vmem>>, vector<32x128xbf16>
    %cst = arith.constant dense<0.000000e+00> : vector<256x128xf32>
    %4 = tpu.matmul %2, %3, %cst {dimension_numbers = #tpu.dot_dimension_numbers<[1], [0], [0], [1], [0, 0, 1, 1], [], []>} : vector<256x32xbf16>, vector<32x128xbf16>, vector<256x128xf32> -> vector<256x128xf32>
    %c0_4 = arith.constant 0 : index
    %c0_5 = arith.constant 0 : index
    %5 = vector.load %arg3[%c0_4, %c0_5] : memref<1x128xf32, #tpu.memory_space<vmem>>, vector<1x128xf32>
    %6 = vector.broadcast %5 : vector<1x128xf32> to vector<256x128xf32>
    %7 = arith.addf %4, %6 : vector<256x128xf32>
    %cst_6 = arith.constant 0.000000e+00 : f32
    %cst_7 = arith.constant 6.000000e+00 : f32
    %8 = vector.broadcast %cst_6 : f32 to vector<256x128xf32>
    %9 = arith.maximumf %8, %7 : vector<256x128xf32>
    %10 = vector.broadcast %cst_7 : f32 to vector<256x128xf32>
    %11 = arith.minimumf %10, %9 : vector<256x128xf32>
    %cst_8 = arith.constant 0.000000e+00 : f32
    %12 = vector.broadcast %cst_8 : f32 to vector<24x128xf32>
    %c0_9 = arith.constant 0 : index
    %c0_10 = arith.constant 0 : index
    %13 = vector.load %arg9[%c0_9, %c0_10] : memref<304x128xf32, #tpu.memory_space<vmem>>, vector<24x128xf32>
    tpu.vector_store %arg9[%c0_9, %c0_10], %12 {strides = array<i32>} : memref<304x128xf32, #tpu.memory_space<vmem>>, vector<24x128xf32>,
    %c280 = arith.constant 280 : index
    %c0_11 = arith.constant 0 : index
    %14 = vector.load %arg9[%c280, %c0_11] : memref<304x128xf32, #tpu.memory_space<vmem>>, vector<24x128xf32>
    tpu.vector_store %arg9[%c280, %c0_11], %12 {strides = array<i32>} : memref<304x128xf32, #tpu.memory_space<vmem>>, vector<24x128xf32>,
    %c24 = arith.constant 24 : index
    %c0_12 = arith.constant 0 : index
    %15 = vector.load %arg9[%c24, %c0_12] : memref<304x128xf32, #tpu.memory_space<vmem>>, vector<256x128xf32>
    tpu.vector_store %arg9[%c24, %c0_12], %11 {strides = array<i32>} : memref<304x128xf32, #tpu.memory_space<vmem>>, vector<256x128xf32>,
    %16 = tpu.iota {dimensions = array<i32: 0>} : vector<256x1xi32>
    %c16_i32 = arith.constant 16 : i32
    %c0_i32 = arith.constant 0 : i32
    %17 = arith.cmpi eq, %c16_i32, %c0_i32 : i32
    %c1_i32 = arith.constant 1 : i32
    %18 = arith.select %17, %c1_i32, %c16_i32 : i32
    %19 = vector.broadcast %18 : i32 to vector<256x1xi32>
    %20 = arith.remsi %16, %19 : vector<256x1xi32>
    %c0_i32_13 = arith.constant 0 : i32
    %21 = vector.broadcast %c0_i32_13 : i32 to vector<256x1xi32>
    %22 = arith.cmpi ne, %20, %21 : vector<256x1xi32>
    %c0_i32_14 = arith.constant 0 : i32
    %23 = vector.broadcast %c0_i32_14 : i32 to vector<256x1xi32>
    %24 = arith.cmpi slt, %20, %23 : vector<256x1xi32>
    %c0_i32_15 = arith.constant 0 : i32
    %25 = arith.cmpi slt, %18, %c0_i32_15 : i32
    %26 = vector.broadcast %25 : i1 to vector<256x1xi1>
    %27 = vector.broadcast %26 : vector<256x1xi1> to vector<256x1xi1>
    %28 = arith.xori %24, %27 : vector<256x1xi1>
    %29 = arith.andi %28, %22 : vector<256x1xi1>
    %30 = vector.broadcast %18 : i32 to vector<256x1xi32>
    %31 = arith.addi %20, %30 : vector<256x1xi32>
    %32 = arith.select %29, %31, %20 : vector<256x1xi1>, vector<256x1xi32>
    %c1_i32_16 = arith.constant 1 : i32
    %33 = vector.broadcast %c1_i32_16 : i32 to vector<256x1xi32>
    %34 = arith.cmpi sge, %32, %33 : vector<256x1xi32>
    %c14_i32 = arith.constant 14 : i32
    %35 = vector.broadcast %c14_i32 : i32 to vector<256x1xi32>
    %36 = arith.cmpi sle, %32, %35 : vector<256x1xi32>
    %c0_17 = arith.constant 0 : index
    %c0_18 = arith.constant 0 : index
    %37 = vector.load %arg4[%c0_17, %c0_18] : memref<9x128xf32, #tpu.memory_space<vmem>>, vector<9x128xf32>
    %cst_19 = arith.constant 0.000000e+00 : f32
    %38 = vector.broadcast %cst_19 : f32 to vector<256x128xf32>
    %c7 = arith.constant 7 : index
    %c0_20 = arith.constant 0 : index
    %39 = vector.load %arg9[%c7, %c0_20] : memref<304x128xf32, #tpu.memory_space<vmem>>, vector<256x128xf32>
    %cst_21 = arith.constant 0.000000e+00 : f32
    %40 = vector.shape_cast %34 : vector<256x1xi1> to vector<256x1xi1>
    %41 = vector.broadcast %40 : vector<256x1xi1> to vector<256x128xi1>
    %42 = vector.broadcast %cst_21 : f32 to vector<256x128xf32>
    %43 = arith.select %41, %39, %42 : vector<256x128xi1>, vector<256x128xf32>
    %44 = vector.extract_strided_slice %37 {offsets = [0, 0], sizes = [1, 128], strides = [1, 1]} : vector<9x128xf32> to vector<1x128xf32>
    %45 = vector.broadcast %44 : vector<1x128xf32> to vector<256x128xf32>
    %46 = arith.mulf %43, %45 : vector<256x128xf32>
    %47 = arith.addf %38, %46 : vector<256x128xf32>
    %c8 = arith.constant 8 : index
    %c0_22 = arith.constant 0 : index
    %48 = vector.load %arg9[%c8, %c0_22] : memref<304x128xf32, #tpu.memory_space<vmem>>, vector<256x128xf32>
    %49 = vector.extract_strided_slice %37 {offsets = [1, 0], sizes = [1, 128], strides = [1, 1]} : vector<9x128xf32> to vector<1x128xf32>
    %50 = vector.broadcast %49 : vector<1x128xf32> to vector<256x128xf32>
    %51 = arith.mulf %48, %50 : vector<256x128xf32>
    %52 = arith.addf %47, %51 : vector<256x128xf32>
    %c9 = arith.constant 9 : index
    %c0_23 = arith.constant 0 : index
    %53 = vector.load %arg9[%c9, %c0_23] : memref<304x128xf32, #tpu.memory_space<vmem>>, vector<256x128xf32>
    %cst_24 = arith.constant 0.000000e+00 : f32
    %54 = vector.shape_cast %36 : vector<256x1xi1> to vector<256x1xi1>
    %55 = vector.broadcast %54 : vector<256x1xi1> to vector<256x128xi1>
    %56 = vector.broadcast %cst_24 : f32 to vector<256x128xf32>
    %57 = arith.select %55, %53, %56 : vector<256x128xi1>, vector<256x128xf32>
    %58 = vector.extract_strided_slice %37 {offsets = [2, 0], sizes = [1, 128], strides = [1, 1]} : vector<9x128xf32> to vector<1x128xf32>
    %59 = vector.broadcast %58 : vector<1x128xf32> to vector<256x128xf32>
    %60 = arith.mulf %57, %59 : vector<256x128xf32>
    %61 = arith.addf %52, %60 : vector<256x128xf32>
    %c23 = arith.constant 23 : index
    %c0_25 = arith.constant 0 : index
    %62 = vector.load %arg9[%c23, %c0_25] : memref<304x128xf32, #tpu.memory_space<vmem>>, vector<256x128xf32>
    %cst_26 = arith.constant 0.000000e+00 : f32
    %63 = vector.shape_cast %34 : vector<256x1xi1> to vector<256x1xi1>
    %64 = vector.broadcast %63 : vector<256x1xi1> to vector<256x128xi1>
    %65 = vector.broadcast %cst_26 : f32 to vector<256x128xf32>
    %66 = arith.select %64, %62, %65 : vector<256x128xi1>, vector<256x128xf32>
    %67 = vector.extract_strided_slice %37 {offsets = [3, 0], sizes = [1, 128], strides = [1, 1]} : vector<9x128xf32> to vector<1x128xf32>
    %68 = vector.broadcast %67 : vector<1x128xf32> to vector<256x128xf32>
    %69 = arith.mulf %66, %68 : vector<256x128xf32>
    %70 = arith.addf %61, %69 : vector<256x128xf32>
    %c24_27 = arith.constant 24 : index
    %c0_28 = arith.constant 0 : index
    %71 = vector.load %arg9[%c24_27, %c0_28] : memref<304x128xf32, #tpu.memory_space<vmem>>, vector<256x128xf32>
    %72 = vector.extract_strided_slice %37 {offsets = [4, 0], sizes = [1, 128], strides = [1, 1]} : vector<9x128xf32> to vector<1x128xf32>
    %73 = vector.broadcast %72 : vector<1x128xf32> to vector<256x128xf32>
    %74 = arith.mulf %71, %73 : vector<256x128xf32>
    %75 = arith.addf %70, %74 : vector<256x128xf32>
    %c25 = arith.constant 25 : index
    %c0_29 = arith.constant 0 : index
    %76 = vector.load %arg9[%c25, %c0_29] : memref<304x128xf32, #tpu.memory_space<vmem>>, vector<256x128xf32>
    %cst_30 = arith.constant 0.000000e+00 : f32
    %77 = vector.shape_cast %36 : vector<256x1xi1> to vector<256x1xi1>
    %78 = vector.broadcast %77 : vector<256x1xi1> to vector<256x128xi1>
    %79 = vector.broadcast %cst_30 : f32 to vector<256x128xf32>
    %80 = arith.select %78, %76, %79 : vector<256x128xi1>, vector<256x128xf32>
    %81 = vector.extract_strided_slice %37 {offsets = [5, 0], sizes = [1, 128], strides = [1, 1]} : vector<9x128xf32> to vector<1x128xf32>
    %82 = vector.broadcast %81 : vector<1x128xf32> to vector<256x128xf32>
    %83 = arith.mulf %80, %82 : vector<256x128xf32>
    %84 = arith.addf %75, %83 : vector<256x128xf32>
    %c39 = arith.constant 39 : index
    %c0_31 = arith.constant 0 : index
    %85 = vector.load %arg9[%c39, %c0_31] : memref<304x128xf32, #tpu.memory_space<vmem>>, vector<256x128xf32>
    %cst_32 = arith.constant 0.000000e+00 : f32
    %86 = vector.shape_cast %34 : vector<256x1xi1> to vector<256x1xi1>
    %87 = vector.broadcast %86 : vector<256x1xi1> to vector<256x128xi1>
    %88 = vector.broadcast %cst_32 : f32 to vector<256x128xf32>
    %89 = arith.select %87, %85, %88 : vector<256x128xi1>, vector<256x128xf32>
    %90 = vector.extract_strided_slice %37 {offsets = [6, 0], sizes = [1, 128], strides = [1, 1]} : vector<9x128xf32> to vector<1x128xf32>
    %91 = vector.broadcast %90 : vector<1x128xf32> to vector<256x128xf32>
    %92 = arith.mulf %89, %91 : vector<256x128xf32>
    %93 = arith.addf %84, %92 : vector<256x128xf32>
    %c40 = arith.constant 40 : index
    %c0_33 = arith.constant 0 : index
    %94 = vector.load %arg9[%c40, %c0_33] : memref<304x128xf32, #tpu.memory_space<vmem>>, vector<256x128xf32>
    %95 = vector.extract_strided_slice %37 {offsets = [7, 0], sizes = [1, 128], strides = [1, 1]} : vector<9x128xf32> to vector<1x128xf32>
    %96 = vector.broadcast %95 : vector<1x128xf32> to vector<256x128xf32>
    %97 = arith.mulf %94, %96 : vector<256x128xf32>
    %98 = arith.addf %93, %97 : vector<256x128xf32>
    %c41 = arith.constant 41 : index
    %c0_34 = arith.constant 0 : index
    %99 = vector.load %arg9[%c41, %c0_34] : memref<304x128xf32, #tpu.memory_space<vmem>>, vector<256x128xf32>
    %cst_35 = arith.constant 0.000000e+00 : f32
    %100 = vector.shape_cast %36 : vector<256x1xi1> to vector<256x1xi1>
    %101 = vector.broadcast %100 : vector<256x1xi1> to vector<256x128xi1>
    %102 = vector.broadcast %cst_35 : f32 to vector<256x128xf32>
    %103 = arith.select %101, %99, %102 : vector<256x128xi1>, vector<256x128xf32>
    %104 = vector.extract_strided_slice %37 {offsets = [8, 0], sizes = [1, 128], strides = [1, 1]} : vector<9x128xf32> to vector<1x128xf32>
    %105 = vector.broadcast %104 : vector<1x128xf32> to vector<256x128xf32>
    %106 = arith.mulf %103, %105 : vector<256x128xf32>
    %107 = arith.addf %98, %106 : vector<256x128xf32>
    %c0_36 = arith.constant 0 : index
    %c0_37 = arith.constant 0 : index
    %108 = vector.load %arg5[%c0_36, %c0_37] : memref<1x128xf32, #tpu.memory_space<vmem>>, vector<1x128xf32>
    %109 = vector.broadcast %108 : vector<1x128xf32> to vector<256x128xf32>
    %110 = arith.addf %107, %109 : vector<256x128xf32>
    %cst_38 = arith.constant 0.000000e+00 : f32
    %cst_39 = arith.constant 6.000000e+00 : f32
    %111 = vector.broadcast %cst_38 : f32 to vector<256x128xf32>
    %112 = arith.maximumf %111, %110 : vector<256x128xf32>
    %113 = vector.broadcast %cst_39 : f32 to vector<256x128xf32>
    %114 = arith.minimumf %113, %112 : vector<256x128xf32>
    %115 = arith.truncf %114 : vector<256x128xf32> to vector<256x128xbf16>
    %c0_40 = arith.constant 0 : index
    %c0_41 = arith.constant 0 : index
    %116 = vector.load %arg6[%c0_40, %c0_41] : memref<128x32xbf16, #tpu.memory_space<vmem>>, vector<128x32xbf16>
    %cst_42 = arith.constant dense<0.000000e+00> : vector<256x32xf32>
    %117 = tpu.matmul %115, %116, %cst_42 {dimension_numbers = #tpu.dot_dimension_numbers<[1], [0], [0], [1], [0, 0, 1, 1], [], []>} : vector<256x128xbf16>, vector<128x32xbf16>, vector<256x32xf32> -> vector<256x32xf32>
    %118 = arith.addf %1, %117 : vector<256x32xf32>
    %c0_43 = arith.constant 0 : index
    %c0_44 = arith.constant 0 : index
    %119 = vector.load %arg7[%c0_43, %c0_44] : memref<1x32xf32, #tpu.memory_space<vmem>>, vector<1x32xf32>
    %120 = vector.broadcast %119 : vector<1x32xf32> to vector<256x32xf32>
    %121 = arith.addf %118, %120 : vector<256x32xf32>
    %c0_45 = arith.constant 0 : index
    %c0_46 = arith.constant 0 : index
    %c0_47 = arith.constant 0 : index
    %122 = vector.load %arg8[%c0_45, %c0_46, %c0_47] : memref<1x256x32xf32, #tpu.memory_space<vmem>>, vector<1x256x32xf32>
    %123 = vector.shape_cast %122 : vector<1x256x32xf32> to vector<256x32xf32>
    %124 = vector.shape_cast %121 : vector<256x32xf32> to vector<1x256x32xf32>
    tpu.vector_store %arg8[%c0_45, %c0_46, %c0_47], %124 {strides = array<i32>} : memref<1x256x32xf32, #tpu.memory_space<vmem>>, vector<1x256x32xf32>,
    return
  }
  func.func @transform_0(%arg0: i32) -> (i32, i32, i32) {
    %c0_i32 = arith.constant 0 : i32
    %c0_i32_0 = arith.constant 0 : i32
    %c0_i32_1 = arith.constant 0 : i32
    return %arg0, %c0_i32, %c0_i32_0 : i32, i32, i32
  }
  func.func @transform_1(%arg0: i32) -> (i32, i32) {
    %c0_i32 = arith.constant 0 : i32
    %c0_i32_0 = arith.constant 0 : i32
    %c0_i32_1 = arith.constant 0 : i32
    return %c0_i32, %c0_i32_0 : i32, i32
  }
  func.func @transform_2(%arg0: i32) -> (i32, i32) {
    %c0_i32 = arith.constant 0 : i32
    %c0_i32_0 = arith.constant 0 : i32
    %c0_i32_1 = arith.constant 0 : i32
    return %c0_i32, %c0_i32_0 : i32, i32
  }
  func.func @transform_3(%arg0: i32) -> (i32, i32) {
    %c0_i32 = arith.constant 0 : i32
    %c0_i32_0 = arith.constant 0 : i32
    %c0_i32_1 = arith.constant 0 : i32
    return %c0_i32, %c0_i32_0 : i32, i32
  }
  func.func @transform_4(%arg0: i32) -> (i32, i32) {
    %c0_i32 = arith.constant 0 : i32
    %c0_i32_0 = arith.constant 0 : i32
    %c0_i32_1 = arith.constant 0 : i32
    return %c0_i32, %c0_i32_0 : i32, i32
  }
  func.func @transform_5(%arg0: i32) -> (i32, i32) {
    %c0_i32 = arith.constant 0 : i32
    %c0_i32_0 = arith.constant 0 : i32
    %c0_i32_1 = arith.constant 0 : i32
    return %c0_i32, %c0_i32_0 : i32, i32
  }
  func.func @transform_6(%arg0: i32) -> (i32, i32) {
    %c0_i32 = arith.constant 0 : i32
    %c0_i32_0 = arith.constant 0 : i32
    %c0_i32_1 = arith.constant 0 : i32
    return %c0_i32, %c0_i32_0 : i32, i32
  }
  func.func @transform_7(%arg0: i32) -> (i32, i32, i32) {
    %c0_i32 = arith.constant 0 : i32
    %c0_i32_0 = arith.constant 0 : i32
    %c0_i32_1 = arith.constant 0 : i32
    return %arg0, %c0_i32, %c0_i32_0 : i32, i32, i32
  }
}

</mosaic_0001>

<bundles_post_ra>
// kernel: fused_inverted_residual.1
= control target key start
LH: loop header
LB: loop body
LE: loop exit
PB: predicated region body
PF: predicated region fallthrough
CT: control target
= control target key end

     0   :  { %12 = vsyncpa [#allocation4], 0  ;;  %s4821_s0 = inlined_call_operand.hbm [shape: f32[2,256,32], index: 0, kind: input, shape index: {}]   ;;  %s4822_s1 = inlined_call_operand.vmem [shape: bf16[32,128], index: 1, kind: input, shape index: {}]   ;;  %s4823_s2 = inlined_call_operand.vmem [shape: f32[1,128], index: 2, kind: input, shape index: {}]   ;;  %s4824_s3 = inlined_call_operand.vmem [shape: f32[9,128], index: 3, kind: input, shape index: {}]   ;;  %s4825_s4 = inlined_call_operand.vmem [shape: f32[1,128], index: 4, kind: input, shape index: {}]   ;;  %s4826_s5 = inlined_call_operand.vmem [shape: bf16[128,32], index: 5, kind: input, shape index: {}]   ;;  %s4827_s6 = inlined_call_operand.vmem [shape: f32[1,32], index: 6, kind: input, shape index: {}]   ;;  %s4828_s7 = inlined_call_operand.hbm [shape: f32[2,256,32], index: 7, kind: output, shape index: {}]  }
   0x1   :  { %14 = vsyncpa [#allocation4 + $0x1], 0 }
   0x2   :  { %15 = vsyncpa [#allocation5], 0 }
   0x3   :  { %17 = vsyncpa [#allocation5 + $0x1], 0  ;;  %s3167_s24 = smov 0   ;;  %s3169_s25 = smov 0  }
   0x4   :  { %s3171_s26 = smov 0   ;;  %s3173_s27 = smov 0  }
   0x5 LB: > { %s3188_s28 = sadd.s32 4294967295, %s3118_s27   ;;  %s2738_s29 = sadd.s32 4294967294, %s3118_s27   ;;  %s3118_s27 = sphi %s3173_s27, %s4975_s27   ;;  %s3114_s26 = sphi %s3171_s26, %s4974_s26   ;;  %s3110_s25 = sphi %s3169_s25, %s4973_s25   ;;  %s3106_s24 = sphi %s3167_s24, %s4972_s24  }
   0x6   : > { %s3192_s30 = sadd.s32 1, %s3118_s27   ;;  %s30_s8 = sadd.s32 1, %s3114_s26 }
   0x7   : > { %s27_s9 = ssub.s32 %s3118_s27, %s3192_s30  ;;  %p37_p0 = scmp.ne.s32.totalorder %s3114_s26, %s3110_s25 }
   0x8   : > { %p28_p1 = scmp.eq.s32.totalorder %s27_s9, 0  ;;  %p38_p2 = scmp.eq.s32.totalorder %s3118_s27, 0 }
   0x9   : > { %p43_p3 = scmp.ne.s32.totalorder %s3110_s25, %s3106_s24  ;;  %p44_p4 = scmp.eq.s32.totalorder %s3188_s28, 0 }
   0xa   : > { %s3204_s10 = scalar_select %p28_p1, %s3114_s26, %s30_s8  }
   0xb   : > { %p3206_p5 = por %p38_p2, %p37_p0  ;;  %p3210_p6 = por %p44_p4, %p43_p3 }
   0xc   : > { %p193_p7 = scmp.eq.s32.totalorder %s3188_s28, 1  ;;  %p199_p8 = scmp.eq.s32.totalorder %s2738_s29, 1 }
   0xd   : > { %p2938_p10 = scmp.lt.s32.totalorder %s3118_s27, 2  ;;  %s237_s15 = sand.u32 1, %s3114_s26  }
   0xe   : > { %p3217_p11 = por %p193_p7, %p37_p0  ;;  %p3221_p12 = por %p199_p8, %p43_p3 }
   0xf   : > { %s2782_s16 = sshll.u32 %s3118_s27, 12  ;;  %s2741_s17 = sshll.u32 %s237_s15, 8 }
  0x10   : > { %s4852_s13 = scalar_select %p3217_p11, 1, 0 }
  0x11   : > { %s4853_s14 = scalar_select %p3221_p12, 1, 0 }
  0x12   : > { %s3230_s20 = scalar_lea.hbm %s4821_s0, %s2782_s16  ;;  %s241_s21 = scalar_lea.vmem [#allocation3], %s2741_s17 }
  0x13   : > { %s248_s22 = sshll.u32 %s241_s21, 4  ;;  %p3234_p13 = pnand %p2938_p10, %p3206_p5  ;;  %s3238_s22 = int_to_ptr.vmem [resolvable:$true] %s248_s22 }
  0x14   : > { %s3240_s29 = scalar_lea.sflag [#allocation4], %s237_s15  ;;  %s3022_s8 = scalar_lea.hbm %s3230_s20, 4096 }
  0x15   : > { %p3023_p0 = scmp.ne.s32.totalorder %s3230_s20, %s3022_s8  ;;  %p3024_p1 = pneg %p3234_p13 }
  0x16   : > { %s3027_s16 = scalar_lea.hbm %s4821_s0, 8192  ;;  %p3028_p4 = scmp.lt.u32.totalorder %s3230_s20, %s4821_s0 }
  0x17   : > { %p3025_p2 = pnand %p3024_p1, %p3023_p0  ;;  %p3029_p5 = scmp.lt.u32.totalorder %s3027_s16, %s3022_s8 }
  0x18   : > { %p3031_p8 = scmp.lt.u32.totalorder %s3022_s8, %s3230_s20 }
  0x19   : > { %p3026_p3 = pneg %p3025_p2  ;;  %p3030_p7 = por %p3029_p5, %p3028_p4 }
  0x1b   : > { %p3032_p10 = por %p3031_p8, %p3030_p7 }
  0x1d   : > { %p3033_p9 = pnand %p3032_p10, %p3026_p3 }
  0x1f   : > { %3036 = shalt.err (!%p3033_p9)
}
  0x20   : > { %s3037_s15 = scalar_lea.vmem %s3238_s22, 4096  ;;  %s3120_s19 = smov [#allocation3]  }
  0x21   : > { %p3038_p0 = scmp.ne.s32.totalorder %s3238_s22, %s3037_s15  ;;  %s3042_s21 = sshll.u32 %s3120_s19, 4  ;;  %s3043_s21 = int_to_ptr.vmem [resolvable:$false] %s3042_s21 }
  0x22   : > { %s3044_s9 = scalar_lea.vmem %s3043_s21, 8192  ;;  %p3045_p11 = scmp.lt.s32.totalorder %s3238_s22, %s3043_s21 }
  0x23   : > { %p3040_p2 = pnand %p3038_p0, %p3024_p1  ;;  %p3046_p4 = scmp.lt.s32.totalorder %s3044_s9, %s3037_s15 }
  0x25   : > { %p3041_p12 = pneg %p3040_p2  ;;  %p3047_p5 = por %p3046_p4, %p3045_p11 }
  0x27   : > { %p3048_p7 = pnand %p3047_p5, %p3041_p12 }
  0x29   : > { %3051 = shalt.err (!%p3048_p7)
}
  0x2a   : > { %s3121_s8 = smov 128   ;;  %s3122_s11 = smov 8  }
  0x2b   : > { %2933 = dma.hbm_to_vmem [thread:$0]  (!%p3234_p13), %s3230_s20, 4096, %s3238_s22, %s3240_s29, %s3121_s8, %s3121_s8, %s3122_s11  }
  0x2c   : > { %p2744_p9 = scmp.ge.s32.totalorder %s3118_s27, 1  ;;  %p256_p1 = scmp.lt.s32.totalorder %s3118_s27, 3 }
  0x2e   : > { %p257_p3 = pnand %p2744_p9, %p256_p1 }
  0x30   : > { %260 = sbr.rel (%p257_p3) target bundleno = 756 (0x2f4), region = 48 }
  0x37   : > { %s3271_s16 = sand.u32 1, %s3110_s25  }
  0x38   : > { %s2745_s17 = sshll.u32 %s3271_s16, 8  ;;  %s263_s18 = scalar_lea.sflag [#allocation4], %s3271_s16 }
  0x39   : > { %s3277_s15 = scalar_lea.vmem [#allocation3], %s2745_s17 }
  0x3a   : > { %3097 = dma.done.wait (%p3210_p6), %s263_s18, 4096  }
  0x3b   : > { %3099 = vsyncadd (%p3210_p6), %s263_s18, 4294963200  ;;  %v2977_v0 = vld [vmem:[%s4822_s1] sm:$0xff]   ;;  %v2978_v1 = vld [vmem:[%s4822_s1 + $0x8] sm:$0xff]   ;;  %vm369_vm0 = vcmask 261120   ;;  %v3123_v50 = vmov 0.0   ;;  %v681_v59 = vlaneseq  ;;  %s4646_s22 = scalar_lea.vmem [#allocation6], %s2745_s17 }
  0x3c   : > { %2826 = vmatprep.subr.bf16.mxu0 %v2977_v0  ;;  %v298_v2 = vld [vmem:[%s3277_s15] sm:$0xff]  ;;  %v299_v3 = vld [vmem:[%s3277_s15 + $0x8] sm:$0xff]  ;;  %v300_v5 = vld [vmem:[%s3277_s15 + $0x10] sm:$0xff]  ;;  %643 = vst [vmem:[#allocation2] sm:$0xff] %v3123_v50  ;;  %s2783_s17 = sshll.u32 %s3188_s28, 12  ;;  %s2665_s23 = sshll.u32 %s4646_s22, 4  ;;  %s4770_s23 = int_to_ptr.vmem [resolvable:$true] %s2665_s23 }
  0x3d   : > { %2827 = vmatpush3.bf16.msra.mxu0 %v2977_v0  ;;  %v330_v4 = vpack.c.bf16 %v299_v3, %v298_v2  ;;  %v301_v6 = vld [vmem:[%s3277_s15 + $0x18] sm:$0xff]  ;;  %v302_v7 = vld [vmem:[%s3277_s15 + $0x20] sm:$0xff]  ;;  %v303_v8 = vld [vmem:[%s3277_s15 + $0x28] sm:$0xff]  ;;  %644 = vst [vmem:[#allocation2 + $0x8] sm:$0xff] %v3123_v50  ;;  %v3361_v60 = vshrl.u32 %v681_v59, 7  ;;  %s4768_s28 = scalar_lea.hbm %s4828_s7, %s2783_s17  ;;  %s3052_s19 = scalar_lea.vmem %s4770_s23, 4096 }
  0x3e   : > { %2828 = vmatprep.subr.bf16.mxu0 %v2978_v1  ;;  %v331_v9 = vpack.c.bf16 %v301_v6, %v300_v5  ;;  %v332_v10 = vpack.c.bf16 %v303_v8, %v302_v7  ;;  %v304_v11 = vld [vmem:[%s3277_s15 + $0x30] sm:$0xff]  ;;  %v305_v12 = vld [vmem:[%s3277_s15 + $0x38] sm:$0xff]  ;;  %v306_v13 = vld [vmem:[%s3277_s15 + $0x40] sm:$0xff]  ;;  %645 = vst [vmem:[#allocation2 + $0x10] sm:$0xff] %v3123_v50  ;;  %p3053_p6 = scmp.ne.s32.totalorder %s4770_s23, %s3052_s19  ;;  %p4969_p11 = scmp.ne.s32.totalorder %s4852_s13, 0 }
  0x3f   : > { %2830 = vmatprep.mubr.msk.bf16.mxu0 %vm369_vm0, %v330_v4  ;;  %v307_v14 = vld [vmem:[%s3277_s15 + $0x48] sm:$0xff]  ;;  %v333_v15 = vpack.c.bf16 %v305_v12, %v304_v11  ;;  %v308_v17 = vld [vmem:[%s3277_s15 + $0x50] sm:$0xff]  ;;  %v309_v18 = vld [vmem:[%s3277_s15 + $0x58] sm:$0xff]  ;;  %646 = vst [vmem:[#allocation2 + $0x118] sm:$0xff] %v3123_v50  ;;  %v718_v61 = vand.u32 15, %v3361_v60  ;;  %v1294_v62 = vsub.s32 0, %v3361_v60 }
  0x40   : > { %v334_v16 = vpack.c.bf16 %v307_v14, %v306_v13  ;;  %v310_v19 = vld [vmem:[%s3277_s15 + $0x60] sm:$0xff]  ;;  %v311_v20 = vld [vmem:[%s3277_s15 + $0x68] sm:$0xff]  ;;  %v335_v21 = vpack.c.bf16 %v309_v18, %v308_v17  ;;  %v312_v23 = vld [vmem:[%s3277_s15 + $0x70] sm:$0xff]  ;;  %647 = vst [vmem:[#allocation2 + $0x120] sm:$0xff] %v3123_v50  ;;  %v1590_v4 = vsub.s32 2, %v3361_v60  ;;  %v683_v12 = vadd.s32 8, %v3361_v60  ;;  %p3054_p12 = pnand %p3053_p6, %p4969_p11 }
  0x41   : > { %2829 = vmatpush3.bf16.msra.mxu0 %v2978_v1  ;;  %v336_v22 = vpack.c.bf16 %v311_v20, %v310_v19  ;;  %v313_v24 = vld [vmem:[%s3277_s15 + $0x78] sm:$0xff]  ;;  %v314_v25 = vld [vmem:[%s3277_s15 + $0x80] sm:$0xff]  ;;  %v315_v26 = vld [vmem:[%s3277_s15 + $0x88] sm:$0xff]  ;;  %648 = vst [vmem:[#allocation2 + $0x128] sm:$0xff] %v3123_v50  ;;  %vm3365_vm1 = vcmp.ge.s32.totalorder %v718_v61, 1  ;;  %v1394_v1 = vsub.s32 1, %v3361_v60 }
  0x42   : > { %v337_v27 = vpack.c.bf16 %v313_v24, %v312_v23  ;;  %v338_v28 = vpack.c.bf16 %v315_v26, %v314_v25  ;;  %v316_v29 = vld [vmem:[%s3277_s15 + $0x90] sm:$0xff]  ;;  %v317_v30 = vld [vmem:[%s3277_s15 + $0x98] sm:$0xff]  ;;  %v318_v31 = vld [vmem:[%s3277_s15 + $0xa0] sm:$0xff]  ;;  %4855 = vst [vmem:[#allocation9_spill] sm:$0xff] %v3361_v60  ;;  %v684_v13 = vadd.s32 16, %v3361_v60  ;;  %v1762_v14 = vsub.s32 4, %v3361_v60  ;;  %p3055_p13 = pneg %p3054_p12 }
  0x43   : > { %v319_v32 = vld [vmem:[%s3277_s15 + $0xa8] sm:$0xff]  ;;  %v339_v33 = vpack.c.bf16 %v317_v30, %v316_v29  ;;  %v320_v35 = vld [vmem:[%s3277_s15 + $0xb0] sm:$0xff]  ;;  %v321_v36 = vld [vmem:[%s3277_s15 + $0xb8] sm:$0xff]  ;;  %v1692_v19 = vsub.s32 3, %v3361_v60  ;;  %v1864_v20 = vsub.s32 5, %v3361_v60  ;;  %v3397_v23 = vadd.s32 32, %v3361_v60 }
  0x44   : > { %2831 = vmatmul.mubr.msk.bf16.vlgmr.msra.gmra.mrb[0].mxu0 %vm369_vm0, %v331_v9  ;;  %v340_v34 = vpack.c.bf16 %v319_v32, %v318_v31  ;;  %v322_v37 = vld [vmem:[%s3277_s15 + $0xc0] sm:$0xff]  ;;  %v323_v38 = vld [vmem:[%s3277_s15 + $0xc8] sm:$0xff]  ;;  %v341_v39 = vpack.c.bf16 %v321_v36, %v320_v35  ;;  %v324_v41 = vld [vmem:[%s3277_s15 + $0xd0] sm:$0xff]  ;;  %v3400_v24 = vadd.s32 40, %v3361_v60  ;;  %v3403_v25 = vadd.s32 48, %v3361_v60  ;;  %s3124_s21 = smov [#allocation6]  }
  0x45   : > { %2834 = vmatprep.mubr.msk.bf16.mxu0 %vm369_vm0, %v332_v10  ;;  %v342_v40 = vpack.c.bf16 %v323_v38, %v322_v37  ;;  %v325_v42 = vld [vmem:[%s3277_s15 + $0xd8] sm:$0xff]  ;;  %v326_v43 = vld [vmem:[%s3277_s15 + $0xe0] sm:$0xff]  ;;  %v327_v44 = vld [vmem:[%s3277_s15 + $0xe8] sm:$0xff]  ;;  %v3406_v26 = vadd.s32 56, %v3361_v60  ;;  %v3411_v29 = vadd.s32 64, %v3361_v60  ;;  %v3414_v30 = vadd.s32 72, %v3361_v60 }
  0x46   : > { %v343_v45 = vpack.c.bf16 %v325_v42, %v324_v41  ;;  %v344_v46 = vpack.c.bf16 %v327_v44, %v326_v43  ;;  %v328_v47 = vld [vmem:[%s3277_s15 + $0xf0] sm:$0xff]  ;;  %v329_v48 = vld [vmem:[%s3277_s15 + $0xf8] sm:$0xff]  ;;  %v2981_v53 = vld [vmem:[%s4826_s5 + $0x10] sm:$0xff]   ;;  %v732_v32 = vand.u32 15, %v684_v13  ;;  %v3459_v59 = vadd.s32 128, %v3361_v60  ;;  %s3056_s9 = sshll.u32 %s3124_s21, 4  ;;  %s3057_s9 = int_to_ptr.vmem [resolvable:$false] %s3056_s9 }
  0x47   : > { %v345_v49 = vpack.c.bf16 %v329_v48, %v328_v47  ;;  %v2979_v51 = vld [vmem:[%s4826_s5] sm:$0xff]   ;;  %v2980_v52 = vld [vmem:[%s4826_s5 + $0x8] sm:$0xff]   ;;  %v2982_v54 = vld [vmem:[%s4826_s5 + $0x18] sm:$0xff]   ;;  %s3058_s8 = scalar_lea.vmem %s3057_s9, 8192  ;;  %p3059_p8 = scmp.lt.s32.totalorder %s4770_s23, %s3057_s9 }
  0x48   : > { %2862 = vmatprep.subr.bf16.mxu0 %v2979_v51  ;;  %2910 = vmatprep.subr.bf16.mxu1 %v2979_v51  ;;  %v2983_v55 = vld [vmem:[%s4826_s5 + $0x20] sm:$0xff]   ;;  %v2984_v56 = vld [vmem:[%s4826_s5 + $0x28] sm:$0xff]   ;;  %v2985_v57 = vld [vmem:[%s4826_s5 + $0x30] sm:$0xff]   ;;  %4861 = vst [vmem:[#allocation13_spill] sm:$0xff] %v3459_v59  ;;  %vm3468_vm2 = vcmp.ge.s32.totalorder %v732_v32, 1  ;;  %p3060_p10 = scmp.lt.s32.totalorder %s3058_s8, %s3052_s19 }
  0x49   : > { %2863 = vmatpush3.bf16.msra.mxu0 %v2979_v51  ;;  %2918 = vmatpush3.bf16.msra.mxu1 %v2979_v51  ;;  %v2986_v58 = vld [vmem:[%s4826_s5 + $0x38] sm:$0xff]   ;;  %v1164_v0 = vld [vmem:[#allocation2 + $0x7] sm:$0xff]  ;;  %v1165_v10 = vld [vmem:[#allocation2 + $0xf] sm:$0xff] }
  0x4a   : > { %2864 = vmatprep.subr.bf16.mxu0 %v2980_v52  ;;  %2911 = vmatprep.subr.bf16.mxu1 %v2980_v52  ;;  %v1162_v2 = vld [vmem:[%s4824_s3] sm:$0xff]  ;;  %v1260_v5 = vsel %vm3365_vm1, %v1164_v0, 0.0  ;;  %v1460_v11 = vld [vmem:[#allocation2 + $0x9] sm:$0xff]  ;;  %v3463_v0 = vadd.s32 120, %v3361_v60  ;;  %p3061_p0 = por %p3060_p10, %p3059_p8 }
  0x4b   : > { %v3373_v3 = vrot.slane %v1162_v2, %v1294_v62  ;;  %v3378_v6 = vrot.slane %v1162_v2, %v1394_v1  ;;  %v3382_v9 = vrot.slane %v1162_v2, %v1590_v4  ;;  %v3419_v31 = vld [vmem:[%s4823_s2] ss:$0 sm:$0xff]  ;;  %v3426_v36 = vrot.slane %v1162_v2, %v1692_v19 }
  0x4c   : > { %2835 = vmatmul.mubr.msk.bf16.gmra.mrb[4].mxu0 %vm369_vm0, %v333_v15  ;;  %v3388_v15 = vadd.s32 24, %v3361_v60  ;;  %v3428_v37 = vrot.slane %v1162_v2, %v1864_v20  ;;  %4862 = vst [vmem:[#allocation14_spill] sm:$0xff] %v3463_v0  ;;  %v3466_v1 = vadd.s32 144, %v3361_v60  ;;  %p3062_p2 = pnand %p3061_p0, %p3055_p13 }
  0x4d   : > { %2838 = vmatprep.mubr.msk.bf16.mxu0 %vm369_vm0, %v334_v16  ;;  %2865 = vmatpush3.bf16.msra.mxu0 %v2980_v52  ;;  %v1296_v7 = vmul.f32 %v3373_v3, %v1260_v5  ;;  %v1396_v8 = vmul.f32 0.0, %v3378_v6  ;;  %v1297_v16 = vmul.f32 %v3373_v3, %v1165_v10  ;;  %v1592_v18 = vmul.f32 %v3382_v9, %v1460_v11 }
  0x4e   : > { %2919 = vmatpush3.bf16.msra.mxu1 %v2980_v52  ;;  %2866 = vmatprep.subr.bf16.mxu0 %v2981_v53  ;;  %v3446_v52 = vadd.s32 96, %v3361_v60  ;;  %4863 = vst [vmem:[#allocation15_spill] sm:$0xff] %v3466_v1  ;;  %v3480_v10 = vadd.s32 160, %v3361_v60 }
  0x4f   : > { %2912 = vmatprep.subr.bf16.mxu1 %v2981_v53  ;;  %v1428_v17 = vadd.f32 %v1396_v8, %v1296_v7 }
  0x50   : > { %4869 = vst [vmem:[#allocation17_spill] sm:$0xff] %v3480_v10 }
  0x51   : > { %2867 = vmatpush3.bf16.msra.mxu0 %v2981_v53  ;;  %v3424_v35 = vadd.f32 %v1592_v18, %v1428_v17 }
  0x52   : > { %2920 = vmatpush3.bf16.msra.mxu1 %v2981_v53  ;;  %2868 = vmatprep.subr.bf16.mxu0 %v2982_v54  ;;  %v3449_v53 = vadd.s32 88, %v3361_v60 }
  0x53   : > { %2913 = vmatprep.subr.bf16.mxu1 %v2982_v54 }
  0x54   : > { %2839 = vmatmul.mubr.msk.bf16.gmra.mrb[8].mxu0 %vm369_vm0, %v335_v21  ;;  %v1966_v21 = vsub.s32 6, %v3361_v60  ;;  %4858 = vst [vmem:[#allocation10_spill] sm:$0xff] %v3449_v53 }
  0x55   : > { %2842 = vmatprep.mubr.msk.bf16.mxu0 %vm369_vm0, %v336_v22  ;;  %2869 = vmatpush3.bf16.msra.mxu0 %v2982_v54  ;;  %v2036_v22 = vsub.s32 7, %v3361_v60 }
  0x56   : > { %2921 = vmatpush3.bf16.msra.mxu1 %v2982_v54  ;;  %2870 = vmatprep.subr.bf16.mxu0 %v2983_v55  ;;  %v3430_v38 = vrot.slane %v1162_v2, %v1966_v21  ;;  %v3452_v54 = vadd.s32 112, %v3361_v60 }
  0x57   : > { %2914 = vmatprep.subr.bf16.mxu1 %v2983_v55 }
  0x58   : > { %4859 = vst [vmem:[#allocation11_spill] sm:$0xff] %v3452_v54 }
  0x59   : > { %2871 = vmatpush3.bf16.msra.mxu0 %v2983_v55 }
  0x5a   : > { %2922 = vmatpush3.bf16.msra.mxu1 %v2983_v55  ;;  %2872 = vmatprep.subr.bf16.mxu0 %v2984_v56 }
  0x5b   : > { %2915 = vmatprep.subr.bf16.mxu1 %v2984_v56 }
  0x5c   : > { %2843 = vmatmul.mubr.msk.bf16.gmra.mrb[12].mxu0 %vm369_vm0, %v337_v27  ;;  %v725_v27 = vand.u32 15, %v683_v12 }
  0x5d   : > { %2846 = vmatprep.mubr.msk.bf16.mxu0 %vm369_vm0, %v338_v28  ;;  %2873 = vmatpush3.bf16.msra.mxu0 %v2984_v56  ;;  %v3408_v28 = vrot.slane %v1162_v2, %v1762_v14  ;;  %v3484_v14 = vadd.s32 152, %v3361_v60 }
  0x5e   : > { %2923 = vmatpush3.bf16.msra.mxu1 %v2984_v56  ;;  %2874 = vmatprep.subr.bf16.mxu0 %v2985_v57  ;;  %vm3472_vm3 = vcmp.le.s32.totalorder %v725_v27, 14 }
  0x5f   : > { %2916 = vmatprep.subr.bf16.mxu1 %v2985_v57  ;;  %4870 = vst [vmem:[#allocation18_spill] sm:$0xff] %v3484_v14 }
  0x61   : > { %2875 = vmatpush3.bf16.msra.mxu0 %v2985_v57 }
  0x62   : > { %2924 = vmatpush3.bf16.msra.mxu1 %v2985_v57  ;;  %2876 = vmatprep.subr.bf16.mxu0 %v2986_v58 }
  0x63   : > { %2917 = vmatprep.subr.bf16.mxu1 %v2986_v58 }
  0x64   : > { %2847 = vmatmul.mubr.msk.bf16.gmra.mrb[16].mxu0 %vm369_vm0, %v339_v33  ;;  %v739_v33 = vand.u32 15, %v3388_v15 }
  0x65   : > { %2850 = vmatprep.mubr.msk.bf16.mxu0 %vm369_vm0, %v340_v34  ;;  %2877 = vmatpush3.bf16.msra.mxu0 %v2986_v58  ;;  %v3422_v34 = vadd.f32 %v1396_v8, %v1297_v16  ;;  %v3477_v8 = vadd.s32 136, %v3361_v60 }
  0x66   : > { %2925 = vmatpush3.bf16.msra.mxu1 %v2986_v58  ;;  %v3456_v58 = vadd.s32 104, %v3361_v60  ;;  %vm3489_vm4 = vcmp.le.s32.totalorder %v739_v33, 14 }
  0x67   : > { %4868 = vst [vmem:[#allocation16_spill] sm:$0xff] %v3477_v8 }
  0x68   : > { %4860 = vst [vmem:[#allocation12_spill] sm:$0xff] %v3456_v58 }
  0x6c   : > { %2851 = vmatmul.mubr.msk.bf16.gmra.mrb[20].mxu0 %vm369_vm0, %v341_v39  ;;  %v3432_v39 = vrot.slane %v1162_v2, %v2036_v22 }
  0x6d   : > { %2854 = vmatprep.mubr.msk.bf16.mxu0 %vm369_vm0, %v342_v40 }
  0x74   : > { %2855 = vmatmul.mubr.msk.bf16.gmra.mrb[24].mxu0 %vm369_vm0, %v343_v45 }
  0x75   : > { %2858 = vmatprep.mubr.msk.bf16.mxu0 %vm369_vm0, %v344_v46 }
  0x7c   : > { %2859 = vmatmul.mubr.msk.bf16.gmra.mrb[28].mxu0 %vm369_vm0, %v345_v49  ;;  %v3442_v49 = vadd.s32 80, %v3361_v60 }
 0x117   : > { %v2832_v40 = vpop.f32.mrb[0].mxu0 }
 0x118   : > { %v461_v45 = vadd.f32 %v2832_v40, %v3419_v31  ;;  %v452_v46 = vpop.f32.mrb[1].mxu0 }
 0x119   : > { %v453_v50 = vadd.f32 %v3419_v31, %v452_v46  ;;  %v2833_v51 = vpop.f32.mrb[2].mxu0 }
 0x11a   : > { %v581_v55 = vmax.f32 %v461_v45, 0.0  ;;  %v464_v56 = vadd.f32 %v2833_v51, %v3419_v31  ;;  %v455_v57 = vpop.f32.mrb[3].mxu0 }
 0x11b   : > { %v579_v61 = vmax.f32 %v453_v50, 0.0  ;;  %v456_v62 = vadd.f32 %v3419_v31, %v455_v57  ;;  %v3513_v50 = vadd.s32 176, %v3361_v60 }
 0x11c   : > { %v613_v2 = vmin.f32 %v581_v55, 6.0  ;;  %v582_v4 = vmax.f32 %v464_v56, 0.0 }
 0x11d   : > { %v611_v11 = vmin.f32 %v579_v61, 6.0  ;;  %v580_v12 = vmax.f32 %v456_v62, 0.0  ;;  %4873 = vst [vmem:[#allocation19_spill] sm:$0xff] %v3513_v50 }
 0x11e   : > { %651 = vst [vmem:[#allocation2 + $0x28] sm:$0xff] %v613_v2  ;;  %v614_v15 = vmin.f32 %v582_v4, 6.0  ;;  %v3502_v56 = vmul.f32 %v3378_v6, %v613_v2  ;;  %v3505_v57 = vmul.f32 %v3408_v28, %v613_v2 }
 0x11f   : > { %649 = vst [vmem:[#allocation2 + $0x18] sm:$0xff] %v611_v11  ;;  %v612_v19 = vmin.f32 %v580_v12, 6.0  ;;  %v2836_v20 = vpop.f32.mrb[4].mxu0  ;;  %v1398_v32 = vmul.f32 %v3378_v6, %v611_v11  ;;  %v3518_v46 = vmul.f32 %v3408_v28, %v611_v11 }
 0x120   : > { %652 = vst [vmem:[#allocation2 + $0x30] sm:$0xff] %v614_v15  ;;  %v477_v40 = vadd.f32 %v2836_v20, %v3419_v31  ;;  %v468_v45 = vpop.f32.mrb[5].mxu0  ;;  %v3510_v20 = vmul.f32 %v3432_v39, %v613_v2  ;;  %v3526_v2 = vmul.f32 %v3408_v28, %v614_v15 }
 0x121   : > { %650 = vst [vmem:[#allocation2 + $0x20] sm:$0xff] %v612_v19  ;;  %v469_v33 = vadd.f32 %v3419_v31, %v468_v45  ;;  %v2837_v55 = vpop.f32.mrb[6].mxu0  ;;  %v3538_v17 = vmul.f32 %v3408_v28, %v612_v19 }
 0x122   : > { %v585_v62 = vmax.f32 %v477_v40, 0.0  ;;  %v480_v4 = vadd.f32 %v2837_v55, %v3419_v31  ;;  %v471_v12 = vpop.f32.mrb[7].mxu0  ;;  %v3523_v55 = vmul.f32 %v3378_v6, %v614_v15 }
 0x123   : > { %v583_v45 = vmax.f32 %v469_v33, 0.0  ;;  %v472_v51 = vadd.f32 %v3419_v31, %v471_v12  ;;  %v1399_v33 = vmul.f32 %v3378_v6, %v612_v19  ;;  %v3532_v12 = vmul.f32 %v3432_v39, %v614_v15 }
 0x124   : > { %v3520_v22 = vmin.f32 %v585_v62, 6.0  ;;  %v586_v40 = vmax.f32 %v480_v4, 0.0 }
 0x125   : > { %v3528_v61 = vmin.f32 %v583_v45, 6.0  ;;  %v584_v27 = vmax.f32 %v472_v51, 0.0  ;;  %v3542_v45 = vadd.s32 168, %v3361_v60 }
 0x126   : > { %655 = vst [vmem:[#allocation2 + $0x48] sm:$0xff] %v3520_v22  ;;  %v3535_v11 = vmin.f32 %v586_v40, 6.0  ;;  %v1166_v62 = vld [vmem:[#allocation2 + $0x17] sm:$0xff]  ;;  %v3553_v19 = vmul.f32 %v3378_v6, %v3520_v22 }
 0x127   : > { %v1461_v4 = vld [vmem:[#allocation2 + $0x11] sm:$0xff]  ;;  %4874 = vst [vmem:[#allocation20_spill] sm:$0xff] %v3542_v45  ;;  %653 = vst [vmem:[#allocation2 + $0x38] sm:$0xff] %v3528_v61  ;;  %v3545_v51 = vmin.f32 %v584_v27, 6.0  ;;  %v2840_v15 = vpop.f32.mrb[8].mxu0  ;;  %v1262_v16 = vsel %vm3468_vm2, %v1166_v62, 0.0  ;;  %v3561_v47 = vmul.f32 %v3432_v39, %v3528_v61 }
 0x128   : > { %v1557_v40 = vsel %vm3472_vm3, %v1461_v4, 0.0  ;;  %656 = vst [vmem:[#allocation2 + $0x50] sm:$0xff] %v3535_v11  ;;  %v493_v18 = vadd.f32 %v2840_v15, %v3419_v31  ;;  %v484_v13 = vpop.f32.mrb[9].mxu0  ;;  %v1167_v48 = vld [vmem:[#allocation2 + $0x1f] sm:$0xff]  ;;  %v1298_v27 = vmul.f32 %v3373_v3, %v1262_v16  ;;  %v1658_v16 = vsel %vm3365_vm1, %v1166_v62, 0.0  ;;  %v3570_v50 = vld [vmem:[#allocation2 + $0x27] sm:$0xff] }
 0x129   : > { %v1462_v44 = vld [vmem:[#allocation2 + $0x19] sm:$0xff]  ;;  %v1593_v42 = vmul.f32 %v3382_v9, %v1557_v40  ;;  %654 = vst [vmem:[#allocation2 + $0x40] sm:$0xff] %v3545_v51  ;;  %v485_v4 = vadd.f32 %v3419_v31, %v484_v13  ;;  %v2841_v43 = vpop.f32.mrb[10].mxu0  ;;  %v1299_v41 = vmul.f32 %v3373_v3, %v1167_v48  ;;  %v1463_v45 = vld [vmem:[#allocation2 + $0x21] sm:$0xff]  ;;  %v3578_v62 = vld [vmem:[#allocation2 + $0x2f] sm:$0xff] }
 0x12a   : > { %v1594_v15 = vmul.f32 %v3382_v9, %v1462_v44  ;;  %v589_v60 = vmax.f32 %v493_v18, 0.0  ;;  %v496_v40 = vadd.f32 %v2841_v43, %v3419_v31  ;;  %v487_v14 = vpop.f32.mrb[11].mxu0  ;;  %v1430_v8 = vadd.f32 %v1398_v32, %v1298_v27 }
 0x12b   : > { %v1559_v10 = vsel %vm3489_vm4, %v1463_v45, 0.0  ;;  %v587_v13 = vmax.f32 %v485_v4, 0.0  ;;  %v488_v0 = vadd.f32 %v3419_v31, %v487_v14  ;;  %v1431_v1 = vadd.f32 %v1399_v33, %v1299_v41 }
 0x12c   : > { %v1595_v58 = vmul.f32 %v3382_v9, %v1559_v10  ;;  %v3576_v59 = vmin.f32 %v589_v60, 6.0  ;;  %v590_v53 = vmax.f32 %v496_v40, 0.0  ;;  %v1625_v43 = vadd.f32 %v1593_v42, %v3422_v34 }
 0x12d   : > { %v1626_v18 = vadd.f32 %v1594_v15, %v1430_v8  ;;  %v3581_v54 = vmin.f32 %v587_v13, 6.0  ;;  %v588_v32 = vmax.f32 %v488_v0, 0.0  ;;  %v1660_v4 = vsel %vm3468_vm2, %v3570_v50, 0.0 }
 0x12e   : > { %4875 = vst [vmem:[#allocation21_spill] sm:$0xff] %v3576_v59  ;;  %v1627_v27 = vadd.f32 %v1595_v58, %v1431_v1  ;;  %659 = vst [vmem:[#allocation2 + $0x68] sm:$0xff] %v3576_v59  ;;  %v3587_v41 = vmin.f32 %v590_v53, 6.0  ;;  %v3589_v60 = vld [vmem:[#allocation2 + $0x31] sm:$0xff]  ;;  %v1694_v10 = vmul.f32 %v3426_v36, %v1658_v16  ;;  %v1695_v14 = vmul.f32 %v3426_v36, %v1167_v48 }
 0x12f   : > { %4876 = vst [vmem:[#allocation22_spill] sm:$0xff] %v3581_v54  ;;  %v1696_v34 = vmul.f32 %v3426_v36, %v1660_v4  ;;  %657 = vst [vmem:[#allocation2 + $0x58] sm:$0xff] %v3581_v54  ;;  %v3595_v42 = vmin.f32 %v588_v32, 6.0  ;;  %v2844_v58 = vpop.f32.mrb[12].mxu0  ;;  %v1697_v0 = vmul.f32 %v3426_v36, %v3578_v62  ;;  %v1831_v53 = vsel %vm3472_vm3, %v1463_v45, 0.0  ;;  %v3609_v32 = vld [vmem:[#allocation2 + $0x29] sm:$0xff] }
 0x130   : > { %4877 = vst [vmem:[#allocation23_spill] sm:$0xff] %v3587_v41  ;;  %v1833_v1 = vsel %vm3489_vm4, %v3589_v60, 0.0  ;;  %660 = vst [vmem:[#allocation2 + $0x70] sm:$0xff] %v3587_v41  ;;  %v509_v48 = vadd.f32 %v2844_v58, %v3419_v31  ;;  %v500_v8 = vpop.f32.mrb[13].mxu0  ;;  %v1726_v33 = vadd.f32 %v1694_v10, %v3424_v35  ;;  %v1727_v15 = vadd.f32 %v1695_v14, %v1625_v43 }
 0x131   : > { %v1728_v16 = vadd.f32 %v1696_v34, %v1626_v18  ;;  %658 = vst [vmem:[#allocation2 + $0x60] sm:$0xff] %v3595_v42  ;;  %v501_v40 = vadd.f32 %v3419_v31, %v500_v8  ;;  %v2845_v13 = vpop.f32.mrb[14].mxu0  ;;  %v1729_v45 = vadd.f32 %v1697_v0, %v1627_v27  ;;  %v1866_v4 = vmul.f32 %v3428_v37, %v1462_v44  ;;  %v3619_v44 = vld [vmem:[#allocation2 + $0x37] sm:$0xff] }
 0x132   : > { %v1867_v59 = vmul.f32 %v3428_v37, %v1831_v53  ;;  %v593_v41 = vmax.f32 %v509_v48, 0.0  ;;  %v512_v58 = vadd.f32 %v2845_v13, %v3419_v31  ;;  %v503_v54 = vpop.f32.mrb[15].mxu0  ;;  %v1796_v35 = vadd.f32 %v3518_v46, %v1726_v33 }
 0x133   : > { %v1797_v43 = vadd.f32 %v3538_v17, %v1727_v15  ;;  %v591_v18 = vmax.f32 %v501_v40, 0.0  ;;  %v504_v10 = vadd.f32 %v3419_v31, %v503_v54  ;;  %v1798_v14 = vadd.f32 %v3505_v57, %v1728_v16  ;;  %v3629_v54 = vld [vmem:[%s4824_s3 + $0x8] ss:$0 sm:$0xff] }
 0x134   : > { %v1799_v34 = vadd.f32 %v3526_v2, %v1729_v45  ;;  %v625_v27 = vmin.f32 %v593_v41, 6.0  ;;  %v594_v0 = vmax.f32 %v512_v58, 0.0  ;;  %v1868_v53 = vmul.f32 %v3428_v37, %v3609_v32 }
 0x135   : > { %v1869_v48 = vmul.f32 %v3428_v37, %v1833_v1  ;;  %v3624_v8 = vmin.f32 %v591_v18, 6.0  ;;  %v592_v46 = vmax.f32 %v504_v10, 0.0  ;;  %v1898_v17 = vadd.f32 %v1866_v4, %v1796_v35  ;;  %v3649_v4 = vld [vmem:[#allocation2 + $0x3f] sm:$0xff] }
 0x136   : > { %v1899_v57 = vadd.f32 %v1867_v59, %v1797_v43  ;;  %v4878_v2 = vand.u32 15, %v3397_v23  ;;  %663 = vst [vmem:[#allocation2 + $0x88] sm:$0xff] %v625_v27  ;;  %v626_v33 = vmin.f32 %v594_v0, 6.0  ;;  %v1900_v15 = vadd.f32 %v1868_v53, %v1798_v14 }
 0x137   : > { %v1901_v1 = vadd.f32 %v1869_v48, %v1799_v34  ;;  %v1932_v16 = vsel %vm3365_vm1, %v3570_v50, 0.0  ;;  %661 = vst [vmem:[#allocation2 + $0x78] sm:$0xff] %v3624_v8  ;;  %v3641_v40 = vmin.f32 %v592_v46, 6.0  ;;  %v2848_v13 = vpop.f32.mrb[16].mxu0  ;;  %v1934_v23 = vsel %vm3468_vm2, %v3619_v44, 0.0 }
 0x138   : > { %vm3633_vm5 = vcmp.ge.s32.totalorder %v4878_v2, 1  ;;  %v1968_v59 = vmul.f32 %v3430_v38, %v1932_v16  ;;  %v1969_v45 = vmul.f32 %v3430_v38, %v3578_v62  ;;  %v4882_v58 = vand.u32 15, %v3403_v25  ;;  %664 = vst [vmem:[#allocation2 + $0x90] sm:$0xff] %v626_v33  ;;  %v516_v43 = vpop.f32.mrb[17].mxu0 }
 0x139   : > { %4881 = vst [vmem:[#allocation24_spill] sm:$0xff] %v3641_v40  ;;  %v525_v35 = vadd.f32 %v2848_v13, %v3419_v31  ;;  %v1970_v5 = vmul.f32 %v3430_v38, %v1934_v23  ;;  %v2105_v18 = vsel %vm3472_vm3, %v3589_v60, 0.0  ;;  %v2140_v10 = vmul.f32 %v3629_v54, %v3609_v32  ;;  %662 = vst [vmem:[#allocation2 + $0x80] sm:$0xff] %v3641_v40  ;;  %v2849_v14 = vpop.f32.mrb[18].mxu0 }
 0x13a   : > { %vm3653_vm6 = vcmp.ge.s32.totalorder %v4882_v58, 1  ;;  %v517_v25 = vadd.f32 %v3419_v31, %v516_v43  ;;  %v2000_v34 = vadd.f32 %v1968_v59, %v1898_v17  ;;  %v2001_v27 = vadd.f32 %v1969_v45, %v1899_v57  ;;  %v519_v46 = vpop.f32.mrb[19].mxu0  ;;  %v3673_v58 = vld [vmem:[#allocation2 + $0x41] sm:$0xff]  ;;  %v3684_v45 = vld [vmem:[%s4825_s4] ss:$0 sm:$0xff] }
 0x13b   : > { %v2141_v0 = vmul.f32 %v3629_v54, %v2105_v18  ;;  %v597_v53 = vmax.f32 %v525_v35, 0.0  ;;  %v528_v48 = vadd.f32 %v2849_v14, %v3419_v31  ;;  %v2002_v2 = vadd.f32 %v1970_v5, %v1900_v15  ;;  %v3686_v35 = vld [vmem:[#allocation2 + $0x39] sm:$0xff] }
 0x13c   : > { %v1971_v7 = vmul.f32 %v3430_v38, %v3649_v4  ;;  %v595_v33 = vmax.f32 %v517_v25, 0.0  ;;  %v520_v16 = vadd.f32 %v3419_v31, %v519_v46  ;;  %v2070_v13 = vadd.f32 %v3510_v20, %v2000_v34 }
 0x13d   : > { %v2071_v23 = vadd.f32 %v3532_v12, %v2001_v27  ;;  %v4885_v17 = vand.u32 15, %v3411_v29  ;;  %v629_v59 = vmin.f32 %v597_v53, 6.0  ;;  %v598_v15 = vmax.f32 %v528_v48, 0.0 }
 0x13e   : > { %v2003_v20 = vadd.f32 %v1971_v7, %v1901_v1  ;;  %v2041_v12 = vmul.f32 %v3432_v39, %v3545_v51  ;;  %v627_v43 = vmin.f32 %v595_v33, 6.0  ;;  %v596_v5 = vmax.f32 %v520_v16, 0.0 }
 0x13f   : > { %vm3677_vm7 = vcmp.ge.s32.totalorder %v4885_v17, 1  ;;  %v2172_v29 = vadd.f32 %v2140_v10, %v2070_v13  ;;  %v2173_v18 = vadd.f32 %v2141_v0, %v2071_v23  ;;  %667 = vst [vmem:[#allocation2 + $0xa8] sm:$0xff] %v629_v59  ;;  %v630_v25 = vmin.f32 %v598_v15, 6.0  ;;  %v2852_v48 = vpop.f32.mrb[20].mxu0 }
 0x140   : > { %v2072_v14 = vadd.f32 %v3561_v47, %v2002_v2  ;;  %v2073_v34 = vadd.f32 %v2041_v12, %v2003_v20  ;;  %v2107_v27 = vsel %vm3489_vm4, %v3673_v58, 0.0  ;;  %665 = vst [vmem:[#allocation2 + $0x98] sm:$0xff] %v627_v43  ;;  %v628_v53 = vmin.f32 %v596_v5, 6.0  ;;  %v532_v7 = vpop.f32.mrb[21].mxu0 }
 0x141   : > { %v2211_v1 = vadd.f32 %v3684_v45, %v2172_v29  ;;  %v2212_v46 = vadd.f32 %v3684_v45, %v2173_v18  ;;  %v2142_v10 = vmul.f32 %v3629_v54, %v3686_v35  ;;  %668 = vst [vmem:[#allocation2 + $0xb0] sm:$0xff] %v630_v25  ;;  %v541_v0 = vadd.f32 %v2852_v48, %v3419_v31  ;;  %v2853_v23 = vpop.f32.mrb[22].mxu0  ;;  %v3731_v48 = vld [vmem:[#allocation2 + $0x47] sm:$0xff] }
 0x142   : > { %v2143_v47 = vmul.f32 %v3629_v54, %v2107_v27  ;;  %v1264_v21 = vsel %vm3633_vm5, %v3570_v50, 0.0  ;;  %v3705_v2 = vmul.f32 %v3408_v28, %v3520_v22  ;;  %666 = vst [vmem:[#allocation2 + $0xa0] sm:$0xff] %v628_v53  ;;  %v533_v33 = vadd.f32 %v3419_v31, %v532_v7  ;;  %v535_v5 = vpop.f32.mrb[23].mxu0 }
 0x143   : > { %v2243_v16 = vmax.f32 %v2211_v1, 0.0  ;;  %v2244_v13 = vmax.f32 %v2212_v46, 0.0  ;;  %v2174_v17 = vadd.f32 %v2142_v10, %v2072_v14  ;;  %v4888_v59 = vand.u32 15, %v3400_v24 }
 0x144   : > { %v4891_v20 = vand.u32 15, %v3406_v26  ;;  %v601_v12 = vmax.f32 %v541_v0, 0.0  ;;  %v544_v43 = vadd.f32 %v2853_v23, %v3419_v31  ;;  %v2175_v29 = vadd.f32 %v2143_v47, %v2073_v34  ;;  %v3737_v23 = vld [vmem:[#allocation2 + $0x4f] sm:$0xff] }
 0x145   : > { %vm3710_vm8 = vcmp.le.s32.totalorder %v4888_v59, 14  ;;  %v4894_v18 = vand.u32 15, %v3414_v30  ;;  %v1266_v24 = vsel %vm3653_vm6, %v3619_v44, 0.0  ;;  %v599_v26 = vmax.f32 %v533_v33, 0.0 }
 0x146   : > { %vm3716_vm9 = vcmp.le.s32.totalorder %v4891_v20, 14  ;;  %v2275_v14 = vmin.f32 %v2243_v16, 6.0  ;;  %v2276_v27 = vmin.f32 %v2244_v13, 6.0  ;;  %v536_v53 = vadd.f32 %v3419_v31, %v535_v5 }
 0x147   : > { %vm3723_vm10 = vcmp.le.s32.totalorder %v4894_v18, 14  ;;  %v633_v1 = vmin.f32 %v601_v12, 6.0  ;;  %v602_v46 = vmax.f32 %v544_v43, 0.0  ;;  %v2213_v34 = vadd.f32 %v3684_v45, %v2174_v17  ;;  %v2856_v20 = vpop.f32.mrb[24].mxu0 }
 0x148   : > { %v2214_v30 = vadd.f32 %v3684_v45, %v2175_v29  ;;  %v631_v10 = vmin.f32 %v599_v26, 6.0  ;;  %v1596_v0 = vmul.f32 %v3382_v9, %v3609_v32  ;;  %v2307_v7 = vpack.c.bf16 %v2276_v27, %v2275_v14  ;;  %v548_v26 = vpop.f32.mrb[25].mxu0 }
 0x149   : > { %v600_v47 = vmax.f32 %v536_v53, 0.0  ;;  %671 = vst [vmem:[#allocation2 + $0xc8] sm:$0xff] %v633_v1  ;;  %v634_v33 = vmin.f32 %v602_v46, 6.0  ;;  %v2245_v16 = vmax.f32 %v2213_v34, 0.0  ;;  %v1268_v59 = vsel %vm3677_vm7, %v3731_v48, 0.0 }
 0x14a   : > { %v2246_v13 = vmax.f32 %v2214_v30, 0.0  ;;  %669 = vst [vmem:[#allocation2 + $0xb8] sm:$0xff] %v631_v10  ;;  %2878 = vmatprep.mubr.bf16.mxu0 %v2307_v7  ;;  %v1300_v12 = vmul.f32 %v3373_v3, %v1264_v21  ;;  %v1301_v32 = vmul.f32 %v3373_v3, %v3578_v62  ;;  %v1302_v43 = vmul.f32 %v3373_v3, %v1266_v24  ;;  %v3755_v24 = vpop.f32.mrb[26].mxu0  ;;  %v3761_v10 = vld [vmem:[#allocation2 + $0x51] sm:$0xff] }
 0x14b   : > { %v632_v17 = vmin.f32 %v600_v47, 6.0  ;;  %672 = vst [vmem:[#allocation2 + $0xd0] sm:$0xff] %v634_v33  ;;  %v2277_v5 = vmin.f32 %v2245_v16, 6.0  ;;  %v557_v18 = vadd.f32 %v2856_v20, %v3419_v31  ;;  %v1303_v14 = vmul.f32 %v3373_v3, %v3649_v4  ;;  %v3763_v7 = vpop.f32.mrb[27].mxu0 }
 0x14c   : > { %v2278_v29 = vmin.f32 %v2246_v13, 6.0  ;;  %v549_v27 = vadd.f32 %v3419_v31, %v548_v26  ;;  %v1304_v53 = vmul.f32 %v3373_v3, %v1268_v59  ;;  %v1305_v21 = vmul.f32 %v3373_v3, %v3737_v23  ;;  %v3767_v59 = vld [vmem:[#allocation2 + $0x49] sm:$0xff]  ;;  %v3775_v26 = vld [vmem:[#allocation2 + $0x57] sm:$0xff] }
 0x14d   : > { %670 = vst [vmem:[#allocation2 + $0xc0] sm:$0xff] %v632_v17  ;;  %v1402_v62 = vmul.f32 %v3378_v6, %v3528_v61  ;;  %v605_v46 = vmax.f32 %v557_v18, 0.0  ;;  %v1403_v34 = vmul.f32 %v3378_v6, %v3545_v51  ;;  %v1405_v30 = vmul.f32 %v3378_v6, %v3535_v11 }
 0x14e   : > { %v2308_v1 = vpack.c.bf16 %v2278_v29, %v2277_v5  ;;  %v603_v47 = vmax.f32 %v549_v27, 0.0  ;;  %v1432_v33 = vadd.f32 %v3502_v56, %v1300_v12  ;;  %v1433_v16 = vadd.f32 %v3523_v55, %v1301_v32 }
 0x14f   : > { %v1434_v13 = vadd.f32 %v1402_v62, %v1302_v43  ;;  %v637_v17 = vmin.f32 %v605_v46, 6.0  ;;  %v1435_v20 = vadd.f32 %v1403_v34, %v1303_v14  ;;  %v1561_v5 = vsel %vm3710_vm8, %v3589_v60, 0.0 }
 0x150   : > { %2879 = vmatmul.mubr.bf16.vlgmr.msra.gmra.mrb[32].mxu0 %v2308_v1  ;;  %v1563_v29 = vsel %vm3716_vm9, %v3673_v58, 0.0  ;;  %v635_v18 = vmin.f32 %v603_v47, 6.0  ;;  %v1565_v56 = vsel %vm3723_vm10, %v3761_v10, 0.0  ;;  %v1597_v55 = vmul.f32 %v3382_v9, %v1561_v5 }
 0x151   : > { %v1598_v12 = vmul.f32 %v3382_v9, %v3686_v35  ;;  %675 = vst [vmem:[#allocation2 + $0xe8] sm:$0xff] %v637_v17  ;;  %v1436_v32 = vadd.f32 %v3553_v19, %v1304_v53  ;;  %v1437_v60 = vadd.f32 %v1405_v30, %v1305_v21  ;;  %v1599_v43 = vmul.f32 %v3382_v9, %v1563_v29  ;;  %v3799_v53 = vpop.f32.mrb[28].mxu0 }
 0x152   : > { %v1600_v14 = vmul.f32 %v3382_v9, %v3767_v59  ;;  %673 = vst [vmem:[#allocation2 + $0xd8] sm:$0xff] %v635_v18  ;;  %v1629_v27 = vadd.f32 %v1597_v55, %v1433_v16  ;;  %v1662_v1 = vsel %vm3633_vm5, %v3619_v44, 0.0  ;;  %v1664_v46 = vsel %vm3653_vm6, %v3731_v48, 0.0  ;;  %v3805_v16 = vpop.f32.mrb[29].mxu0 }
 0x153   : > { %v1630_v62 = vadd.f32 %v1598_v12, %v1434_v13  ;;  %v4897_v34 = vand.u32 15, %v3442_v49  ;;  %v1601_v21 = vmul.f32 %v3382_v9, %v1565_v56  ;;  %v1628_v30 = vadd.f32 %v1596_v0, %v1432_v33  ;;  %v3813_v29 = vpop.f32.mrb[30].mxu0 }
 0x154   : > { %v1631_v47 = vadd.f32 %v1599_v43, %v1435_v20  ;;  %v1666_v44 = vsel %vm3677_vm7, %v3775_v26, 0.0  ;;  %v1698_v13 = vmul.f32 %v3426_v36, %v1662_v1  ;;  %v1699_v49 = vmul.f32 %v3426_v36, %v3649_v4  ;;  %v3822_v56 = vpop.f32.mrb[31].mxu0 }
 0x155   : > { %vm3795_vm11 = vcmp.ge.s32.totalorder %v4897_v34, 1  ;;  %v1700_v17 = vmul.f32 %v3426_v36, %v1664_v46  ;;  %v1701_v5 = vmul.f32 %v3426_v36, %v3737_v23  ;;  %v1702_v0 = vmul.f32 %v3426_v36, %v1666_v44 }
 0x156   : > { %v1768_v33 = vmul.f32 %v3408_v28, %v3528_v61  ;;  %v1769_v20 = vmul.f32 %v3408_v28, %v3545_v51  ;;  %v1771_v18 = vmul.f32 %v3408_v28, %v3535_v11  ;;  %v1730_v4 = vadd.f32 %v1698_v13, %v1628_v30  ;;  %v1175_v13 = vld [vmem:[#allocation2 + $0x5f] sm:$0xff] }
 0x157   : > { %v1731_v55 = vadd.f32 %v1699_v49, %v1629_v27  ;;  %v1732_v12 = vadd.f32 %v1700_v17, %v1630_v62  ;;  %v1733_v43 = vadd.f32 %v1701_v5, %v1631_v47  ;;  %v1632_v1 = vadd.f32 %v1600_v14, %v1436_v32 }
 0x158   : > { %v1835_v46 = vsel %vm3710_vm8, %v3673_v58, 0.0  ;;  %v1837_v61 = vsel %vm3716_vm9, %v3761_v10, 0.0  ;;  %v1870_v51 = vmul.f32 %v3428_v37, %v3686_v35  ;;  %v1800_v34 = vadd.f32 %v1768_v33, %v1730_v4 }
 0x159   : > { %v1801_v44 = vadd.f32 %v1769_v20, %v1731_v55  ;;  %v1802_v40 = vadd.f32 %v3705_v2, %v1732_v12  ;;  %v1803_v30 = vadd.f32 %v1771_v18, %v1733_v43  ;;  %v3833_v27 = vadd.f32 %v1601_v21, %v1437_v60  ;;  %v4903_v43 = vld [vmem:[#allocation22_spill] sm:$0xff] }
 0x15a   : > { %v1871_v32 = vmul.f32 %v3428_v37, %v1835_v46  ;;  %v1936_v58 = vsel %vm3633_vm5, %v3731_v48, 0.0  ;;  %v2042_v14 = vmul.f32 %v3432_v39, %v3520_v22  ;;  %v3841_v62 = vadd.f32 %v1702_v0, %v1632_v1 }
 0x15b   : > { %v1872_v35 = vmul.f32 %v3428_v37, %v3767_v59  ;;  %v1902_v47 = vadd.f32 %v1870_v51, %v1800_v34  ;;  %v1972_v2 = vmul.f32 %v3430_v38, %v1936_v58  ;;  %v1873_v60 = vmul.f32 %v3428_v37, %v1837_v61 }
 0x15c   : > { %v1903_v21 = vadd.f32 %v1871_v32, %v1801_v44  ;;  %v1973_v49 = vmul.f32 %v3430_v38, %v3737_v23  ;;  %v2043_v41 = vmul.f32 %v3432_v39, %v3535_v11  ;;  %v2109_v22 = vsel %vm3710_vm8, %v3761_v10, 0.0 }
 0x15d   : > { %v2004_v48 = vadd.f32 %v1972_v2, %v1902_v47  ;;  %v560_v17 = vadd.f32 %v3755_v24, %v3419_v31  ;;  %v552_v5 = vadd.f32 %v3419_v31, %v3763_v7  ;;  %v4900_v0 = vand.u32 15, %v3446_v52  ;;  %v1470_v52 = vld [vmem:[#allocation2 + $0x59] sm:$0xff] }
 0x15e   : > { %v2005_v23 = vadd.f32 %v1973_v49, %v1903_v21  ;;  %v2144_v11 = vmul.f32 %v3629_v54, %v3767_v59  ;;  %v1270_v15 = vsel %vm3795_vm11, %v3775_v26, 0.0  ;;  %v1307_v10 = vmul.f32 %v3373_v3, %v1175_v13 }
 0x15f   : > { %vm3860_vm12 = vcmp.ge.s32.totalorder %v4900_v0, 1  ;;  %v2074_v24 = vadd.f32 %v2042_v14, %v2004_v48  ;;  %v606_v20 = vmax.f32 %v560_v17, 0.0  ;;  %v604_v18 = vmax.f32 %v552_v5, 0.0 }
 0x160   : > { %v1306_v7 = vmul.f32 %v3373_v3, %v1270_v15  ;;  %v1904_v4 = vadd.f32 %v1872_v35, %v1802_v40  ;;  %v2075_v55 = vadd.f32 %v2043_v41, %v2005_v23  ;;  %v2145_v12 = vmul.f32 %v3629_v54, %v2109_v22  ;;  %v3884_v35 = vld [vmem:[#allocation2 + $0x61] sm:$0xff] }
 0x161   : > { %v1406_v1 = vmul.f32 %v3378_v6, %v4903_v43  ;;  %v2176_v59 = vadd.f32 %v2144_v11, %v2074_v24  ;;  %v638_v46 = vmin.f32 %v606_v20, 6.0  ;;  %v3874_v61 = vmin.f32 %v604_v18, 6.0  ;;  %v3900_v23 = vld [vmem:[#allocation2 + $0x67] sm:$0xff] }
 0x162   : > { %v1407_v51 = vmul.f32 %v3378_v6, %v3595_v42  ;;  %v2177_v34 = vadd.f32 %v2145_v12, %v2075_v55  ;;  %v1602_v32 = vmul.f32 %v3382_v9, %v1470_v52  ;;  %v1703_v58 = vmul.f32 %v3426_v36, %v1175_v13 }
 0x163   : > { %v1438_v44 = vadd.f32 %v1406_v1, %v1306_v7  ;;  %v2215_v40 = vadd.f32 %v3684_v45, %v2176_v59  ;;  %676 = vst [vmem:[#allocation2 + $0xf0] sm:$0xff] %v638_v46  ;;  %674 = vst [vmem:[#allocation2 + $0xe0] sm:$0xff] %v3874_v61  ;;  %v1772_v47 = vmul.f32 %v3408_v28, %v4903_v43  ;;  %v1938_v41 = vsel %vm3653_vm6, %v3775_v26, 0.0 }
 0x164   : > { %v3882_v14 = vadd.f32 %v1407_v51, %v1307_v10  ;;  %v1773_v2 = vmul.f32 %v3408_v28, %v3595_v42  ;;  %v2216_v21 = vadd.f32 %v3684_v45, %v2177_v34  ;;  %v1905_v49 = vadd.f32 %v1873_v60, %v1803_v30  ;;  %v1177_v30 = vld [vmem:[#allocation2 + $0x6f] sm:$0xff] }
 0x165   : > { %v1975_v48 = vmul.f32 %v3430_v38, %v1175_v13  ;;  %v2247_v22 = vmax.f32 %v2215_v40, 0.0  ;;  %v1974_v17 = vmul.f32 %v3430_v38, %v1938_v41  ;;  %v2044_v5 = vmul.f32 %v3432_v39, %v4903_v43  ;;  %v4904_v43 = vld [vmem:[#allocation11_spill] sm:$0xff]  ;;  %v3924_v40 = vld [vmem:[#allocation2 + $0x69] sm:$0xff] }
 0x166   : > { %v2045_v0 = vmul.f32 %v3432_v39, %v3595_v42  ;;  %v2248_v11 = vmax.f32 %v2216_v21, 0.0  ;;  %v2111_v63 = vsel %vm3716_vm9, %v3884_v35, 0.0  ;;  %v2146_v26 = vmul.f32 %v3629_v54, %v1470_v52 }
 0x167   : > { %v2007_v15 = vadd.f32 %v1975_v48, %v1905_v49  ;;  %v2279_v13 = vmin.f32 %v2247_v22, 6.0  ;;  %v2006_v60 = vadd.f32 %v1974_v17, %v1904_v4  ;;  %v2147_v10 = vmul.f32 %v3629_v54, %v2111_v63  ;;  %v4909_v22 = vld [vmem:[#allocation10_spill] sm:$0xff] }
 0x168   : > { %v573_v24 = vadd.f32 %v3799_v53, %v3419_v31  ;;  %v2280_v20 = vmin.f32 %v2248_v11, 6.0  ;;  %v565_v18 = vadd.f32 %v3419_v31, %v3805_v16  ;;  %v1272_v50 = vsel %vm3860_vm12, %v3900_v23, 0.0  ;;  %v4908_v16 = vld [vmem:[#allocation21_spill] sm:$0xff] }
 0x169   : > { %v2077_v42 = vadd.f32 %v2045_v0, %v2007_v15  ;;  %v2076_v7 = vadd.f32 %v2044_v5, %v2006_v60  ;;  %v1308_v12 = vmul.f32 %v3373_v3, %v1272_v50  ;;  %v1309_v4 = vmul.f32 %v3373_v3, %v1177_v30  ;;  %v4913_v15 = vld [vmem:[#allocation23_spill] sm:$0xff] }
 0x16a   : > { %v609_v55 = vmax.f32 %v573_v24, 0.0  ;;  %v4905_v1 = vand.u32 15, %v4904_v43  ;;  %v2309_v53 = vpack.c.bf16 %v2280_v20, %v2279_v13  ;;  %v607_v51 = vmax.f32 %v565_v18, 0.0 }
 0x16b   : > { %v2179_v46 = vadd.f32 %v2147_v10, %v2077_v42  ;;  %v1408_v34 = vmul.f32 %v3378_v6, %v4908_v16  ;;  %v3926_v21 = vadd.f32 %v1602_v32, %v1438_v44  ;;  %v1839_v49 = vsel %vm3723_vm10, %v3884_v35, 0.0 }
 0x16c   : > { %vm3918_vm13 = vcmp.ge.s32.totalorder %v4905_v1, 1  ;;  %v2178_v41 = vadd.f32 %v2146_v26, %v2076_v7  ;;  %v641_v48 = vmin.f32 %v609_v55, 6.0  ;;  %v4910_v17 = vand.u32 15, %v4909_v22  ;;  %2882 = vmatprep.mubr.bf16.mxu1 %v2309_v53 }
 0x16d   : > { %v2218_v0 = vadd.f32 %v3684_v45, %v2179_v46  ;;  %v639_v11 = vmin.f32 %v607_v51, 6.0  ;;  %v1409_v44 = vmul.f32 %v3378_v6, %v4913_v15  ;;  %v1440_v32 = vadd.f32 %v1408_v34, %v1308_v12  ;;  %v3962_v51 = vld [vmem:[#allocation2 + $0x77] sm:$0xff] }
 0x16e   : > { %vm3933_vm14 = vcmp.le.s32.totalorder %v4910_v17, 14  ;;  %v1874_v63 = vmul.f32 %v3428_v37, %v1470_v52  ;;  %v2217_v13 = vadd.f32 %v3684_v45, %v2178_v41  ;;  %679 = vst [vmem:[#allocation2 + $0x108] sm:$0xff] %v641_v48  ;;  %v1604_v26 = vmul.f32 %v3382_v9, %v3924_v40  ;;  %v3951_v52 = vld [vmem:[#allocation2 + $0x71] sm:$0xff]  ;;  %v1179_v41 = vld [vmem:[#allocation2 + $0x7f] sm:$0xff] }
 0x16f   : > { %v1735_v60 = vadd.f32 %v1703_v58, %v3833_v27  ;;  %v2250_v10 = vmax.f32 %v2218_v0, 0.0  ;;  %677 = vst [vmem:[#allocation2 + $0xf8] sm:$0xff] %v639_v11  ;;  %v3945_v24 = vadd.f32 %v1409_v44, %v1309_v4  ;;  %v1668_v20 = vsel %vm3795_vm11, %v3900_v23, 0.0 }
 0x170   : > { %v1705_v42 = vmul.f32 %v3426_v36, %v1177_v30  ;;  %v2249_v18 = vmax.f32 %v2217_v13, 0.0  ;;  %v1804_v50 = vadd.f32 %v1772_v47, %v3841_v62  ;;  %v1875_v55 = vmul.f32 %v3428_v37, %v1839_v49 }
 0x171   : > { %v1805_v7 = vadd.f32 %v1773_v2, %v1735_v60  ;;  %v2282_v12 = vmin.f32 %v2250_v10, 6.0  ;;  %v3955_v27 = vadd.f32 %v1604_v26, %v1440_v32  ;;  %v1940_v58 = vsel %vm3677_vm7, %v3900_v23, 0.0  ;;  %v3986_v32 = vld [vmem:[#allocation2 + $0x79] sm:$0xff] }
 0x172   : > { %v1977_v4 = vmul.f32 %v3430_v38, %v1177_v30  ;;  %v2281_v43 = vmin.f32 %v2249_v18, 6.0  ;;  %v1906_v1 = vadd.f32 %v1874_v63, %v1804_v50  ;;  %v1976_v46 = vmul.f32 %v3430_v38, %v1940_v58  ;;  %v4914_v63 = vld [vmem:[#allocation13_spill] sm:$0xff] }
 0x173   : > { %v1907_v53 = vadd.f32 %v1875_v55, %v1805_v7  ;;  %v1774_v62 = vmul.f32 %v3408_v28, %v4908_v16  ;;  %v2046_v47 = vmul.f32 %v3432_v39, %v4908_v16  ;;  %v2047_v2 = vmul.f32 %v3432_v39, %v4913_v15  ;;  %v4918_v55 = vld [vmem:[#allocation12_spill] sm:$0xff] }
 0x174   : > { %v2113_v57 = vsel %vm3723_vm10, %v3951_v52, 0.0  ;;  %v2310_v23 = vpack.c.bf16 %v2282_v12, %v2281_v43  ;;  %v2008_v30 = vadd.f32 %v1976_v46, %v1906_v1  ;;  %v2148_v49 = vmul.f32 %v3629_v54, %v3924_v40  ;;  %v4922_v1 = vld [vmem:[#allocation24_spill] sm:$0xff] }
 0x175   : > { %v2009_v34 = vadd.f32 %v1977_v4, %v1907_v53  ;;  %v2149_v48 = vmul.f32 %v3629_v54, %v2113_v57  ;;  %v576_v22 = vadd.f32 %v3813_v29, %v3419_v31  ;;  %v568_v16 = vadd.f32 %v3419_v31, %v3822_v56 }
 0x176   : > { %v1274_v25 = vsel %vm3918_vm13, %v3962_v51, 0.0  ;;  %2883 = vmatmul.mubr.bf16.vlgmr.msra.gmra.mrb[0].mxu1 %v2310_v23  ;;  %v2078_v17 = vadd.f32 %v2046_v47, %v2008_v30  ;;  %v1410_v44 = vmul.f32 %v3378_v6, %v3624_v8  ;;  %v4915_v13 = vand.u32 15, %v4914_v63 }
 0x177   : > { %v2079_v0 = vadd.f32 %v2047_v2, %v2009_v34  ;;  %v1310_v11 = vmul.f32 %v3373_v3, %v1274_v25  ;;  %v610_v31 = vmax.f32 %v576_v22, 0.0  ;;  %v608_v56 = vmax.f32 %v568_v16, 0.0 }
 0x178   : > { %vm3990_vm15 = vcmp.ge.s32.totalorder %v4915_v13, 1  ;;  %v1311_v26 = vmul.f32 %v3373_v3, %v1179_v41  ;;  %v1567_v60 = vsel %vm3933_vm14, %v3884_v35, 0.0  ;;  %v2180_v10 = vadd.f32 %v2148_v49, %v2078_v17 }
 0x179   : > { %v2181_v18 = vadd.f32 %v2149_v48, %v2079_v0  ;;  %v1442_v50 = vadd.f32 %v1410_v44, %v1310_v11  ;;  %v1603_v7 = vmul.f32 %v3382_v9, %v1567_v60  ;;  %v4919_v12 = vand.u32 15, %v4918_v55 }
 0x17a   : > { %v642_v4 = vmin.f32 %v610_v31, 6.0  ;;  %v4005_v43 = vmin.f32 %v608_v56, 6.0  ;;  %v1411_v53 = vmul.f32 %v3378_v6, %v4922_v1  ;;  %v1606_v35 = vmul.f32 %v3382_v9, %v3986_v32  ;;  %v1376_v56 = vld [vmem:[#allocation2 + $0x88] sm:$0xff] }
 0x17b   : > { %vm4001_vm1 = vcmp.le.s32.totalorder %v4919_v12, 14  ;;  %v1775_v46 = vmul.f32 %v3408_v28, %v4913_v15  ;;  %v2219_v47 = vadd.f32 %v3684_v45, %v2180_v10  ;;  %v2220_v2 = vadd.f32 %v3684_v45, %v2181_v18 }
 0x17c   : > { %v1635_v57 = vadd.f32 %v1603_v7, %v3882_v14  ;;  %v1876_v23 = vmul.f32 %v3428_v37, %v3924_v40  ;;  %680 = vst [vmem:[#allocation2 + $0x110] sm:$0xff] %v642_v4  ;;  %678 = vst [vmem:[#allocation2 + $0x100] sm:$0xff] %v4005_v43  ;;  %v4019_v30 = vadd.f32 %v1411_v53, %v1311_v26  ;;  %v1670_v34 = vsel %vm3860_vm12, %v3962_v51, 0.0 }
 0x17d   : > { %v1704_v15 = vmul.f32 %v3426_v36, %v1668_v20  ;;  %v2251_v49 = vmax.f32 %v2219_v47, 0.0  ;;  %v2252_v48 = vmax.f32 %v2220_v2, 0.0  ;;  %v4025_v22 = vadd.f32 %v1606_v35, %v1442_v50  ;;  %v4035_v20 = vld [vmem:[#allocation2 + $0x81] sm:$0xff]  ;;  %v4048_v50 = vld [vmem:[#allocation2 + $0x90] sm:$0xff] }
 0x17e   : > { %v1737_v16 = vadd.f32 %v1705_v42, %v1635_v57  ;;  %v1707_v14 = vmul.f32 %v3426_v36, %v1179_v41  ;;  %v1841_v25 = vsel %vm3933_vm14, %v3951_v52, 0.0  ;;  %v1942_v17 = vsel %vm3795_vm11, %v3962_v51, 0.0  ;;  %v4038_v42 = vld [vmem:[#allocation2 + $0x87] sm:$0xff]  ;;  %v1181_v51 = vld [vmem:[#allocation2 + $0x8f] sm:$0xff] }
 0x17f   : > { %v1736_v40 = vadd.f32 %v1704_v15, %v3926_v21  ;;  %v2283_v0 = vmin.f32 %v2251_v49, 6.0  ;;  %v2284_v11 = vmin.f32 %v2252_v48, 6.0  ;;  %v1877_v63 = vmul.f32 %v3428_v37, %v1841_v25  ;;  %v4923_v47 = vld [vmem:[#allocation15_spill] sm:$0xff]  ;;  %v4927_v25 = vld [vmem:[#allocation14_spill] sm:$0xff] }
 0x180   : > { %v1807_v44 = vadd.f32 %v1775_v46, %v1737_v16  ;;  %v1776_v21 = vmul.f32 %v3408_v28, %v3624_v8  ;;  %v1777_v13 = vmul.f32 %v3408_v28, %v4922_v1  ;;  %v1878_v19 = vmul.f32 %v3428_v37, %v3986_v32  ;;  %v4061_v46 = vld [vmem:[#allocation2 + $0x89] sm:$0xff] }
 0x181   : > { %v1806_v31 = vadd.f32 %v1774_v62, %v1736_v40  ;;  %v2311_v26 = vpack.c.bf16 %v2284_v11, %v2283_v0  ;;  %v1978_v10 = vmul.f32 %v3430_v38, %v1942_v17  ;;  %v1979_v18 = vmul.f32 %v3430_v38, %v1179_v41 }
 0x182   : > { %v1909_v60 = vadd.f32 %v1877_v63, %v1807_v44  ;;  %v2049_v55 = vmul.f32 %v3432_v39, %v4922_v1  ;;  %v2115_v62 = vsel %vm3933_vm14, %v4035_v20, 0.0  ;;  %v1276_v12 = vsel %vm3990_vm15, %v4038_v42, 0.0 }
 0x183   : > { %v1908_v7 = vadd.f32 %v1876_v23, %v1806_v31  ;;  %2886 = vmatprep.mubr.bf16.mxu1 %v2311_v26  ;;  %v1312_v53 = vmul.f32 %v3373_v3, %v1276_v12  ;;  %v1313_v41 = vmul.f32 %v3373_v3, %v1181_v51  ;;  %v1412_v35 = vmul.f32 %v3378_v6, %v1376_v56 }
 0x184   : > { %v2011_v4 = vadd.f32 %v1979_v18, %v1909_v60  ;;  %v4924_v1 = vand.u32 15, %v4923_v47  ;;  %v2048_v57 = vmul.f32 %v3432_v39, %v3624_v8  ;;  %v1413_v23 = vmul.f32 %v3378_v6, %v4048_v50 }
 0x185   : > { %v2010_v5 = vadd.f32 %v1978_v10, %v1908_v7  ;;  %v1569_v15 = vsel %vm4001_vm1, %v3951_v52, 0.0  ;;  %v2151_v48 = vmul.f32 %v3629_v54, %v2115_v62  ;;  %v1444_v16 = vadd.f32 %v1412_v35, %v1312_v53 }
 0x186   : > { %vm4065_vm2 = vcmp.ge.s32.totalorder %v4924_v1, 1  ;;  %v2081_v49 = vadd.f32 %v2049_v55, %v2011_v4  ;;  %v1605_v40 = vmul.f32 %v3382_v9, %v1569_v15  ;;  %v4928_v17 = vand.u32 15, %v4927_v25  ;;  %v4105_v4 = vld [vmem:[#allocation2 + $0x91] sm:$0xff] }
 0x187   : > { %v2080_v8 = vadd.f32 %v2048_v57, %v2010_v5  ;;  %v2150_v11 = vmul.f32 %v3629_v54, %v3986_v32  ;;  %v1608_v44 = vmul.f32 %v3382_v9, %v4061_v46  ;;  %v1706_v52 = vmul.f32 %v3426_v36, %v1670_v34  ;;  %v1183_v57 = vld [vmem:[#allocation2 + $0x9f] sm:$0xff] }
 0x188   : > { %vm4080_vm3 = vcmp.le.s32.totalorder %v4928_v17, 14  ;;  %v2183_v63 = vadd.f32 %v2151_v48, %v2081_v49  ;;  %v4089_v31 = vadd.f32 %v1413_v23, %v1313_v41  ;;  %v1637_v26 = vadd.f32 %v1605_v40, %v3945_v24  ;;  %v1378_v48 = vld [vmem:[#allocation2 + $0x98] sm:$0xff] }
 0x189   : > { %v1672_v60 = vsel %vm3918_vm13, %v4038_v42, 0.0  ;;  %v2182_v10 = vadd.f32 %v2150_v11, %v2080_v8  ;;  %v1709_v18 = vmul.f32 %v3426_v36, %v1181_v51  ;;  %v1738_v7 = vadd.f32 %v1706_v52, %v3955_v27  ;;  %v4127_v17 = vld [vmem:[#allocation2 + $0x99] sm:$0xff]  ;;  %v4931_v52 = vld [vmem:[#allocation17_spill] sm:$0xff] }
 0x18a   : > { %v1843_v32 = vsel %vm4001_vm1, %v4035_v20, 0.0  ;;  %v2222_v34 = vadd.f32 %v3684_v45, %v2183_v63  ;;  %v4101_v55 = vadd.f32 %v1608_v44, %v1444_v16  ;;  %v1739_v62 = vadd.f32 %v1707_v14, %v1637_v26  ;;  %v4113_v14 = vld [vmem:[#allocation2 + $0x97] sm:$0xff]  ;;  %v1379_v16 = vld [vmem:[#allocation2 + $0xa0] sm:$0xff] }
 0x18b   : > { %v1778_v24 = vmul.f32 %v3408_v28, %v1376_v56  ;;  %v2221_v12 = vadd.f32 %v3684_v45, %v2182_v10  ;;  %v1808_v53 = vadd.f32 %v1776_v21, %v1738_v7  ;;  %v1879_v41 = vmul.f32 %v3428_v37, %v1843_v32 }
 0x18c   : > { %v1944_v27 = vsel %vm3860_vm12, %v4038_v42, 0.0  ;;  %v2254_v35 = vmax.f32 %v2222_v34, 0.0  ;;  %v1809_v47 = vadd.f32 %v1777_v13, %v1739_v62  ;;  %v1981_v5 = vmul.f32 %v3430_v38, %v1181_v51 }
 0x18d   : > { %v1980_v1 = vmul.f32 %v3430_v38, %v1944_v27  ;;  %v2253_v23 = vmax.f32 %v2221_v12, 0.0  ;;  %v1910_v15 = vadd.f32 %v1878_v19, %v1808_v53  ;;  %v2050_v49 = vmul.f32 %v3432_v39, %v1376_v56  ;;  %v4935_v27 = vld [vmem:[#allocation16_spill] sm:$0xff] }
 0x18e   : > { %v2051_v21 = vmul.f32 %v3432_v39, %v4048_v50  ;;  %v2286_v33 = vmin.f32 %v2254_v35, 6.0  ;;  %v1911_v42 = vadd.f32 %v1879_v41, %v1809_v47  ;;  %v2117_v13 = vsel %vm4001_vm1, %v4105_v4, 0.0 }
 0x18f   : > { %v2152_v51 = vmul.f32 %v3629_v54, %v4061_v46  ;;  %v2285_v40 = vmin.f32 %v2253_v23, 6.0  ;;  %v2012_v25 = vadd.f32 %v1980_v1, %v1910_v15  ;;  %v1278_v19 = vsel %vm4065_vm2, %v4113_v14, 0.0 }
 0x190   : > { %v1315_v56 = vmul.f32 %v3373_v3, %v1183_v57  ;;  %v2013_v8 = vadd.f32 %v1981_v5, %v1911_v42  ;;  %v1314_v11 = vmul.f32 %v3373_v3, %v1278_v19  ;;  %v1414_v44 = vmul.f32 %v3378_v6, %v1378_v48  ;;  %v4174_v19 = vld [vmem:[#allocation2 + $0xa1] sm:$0xff] }
 0x191   : > { %v1415_v58 = vmul.f32 %v3378_v6, %v1379_v16  ;;  %v4932_v63 = vand.u32 15, %v4931_v52  ;;  %v2312_v10 = vpack.c.bf16 %v2286_v33, %v2285_v40  ;;  %v2082_v7 = vadd.f32 %v2050_v49, %v2012_v25 }
 0x192   : > { %v2153_v32 = vmul.f32 %v3629_v54, %v2117_v13  ;;  %v1571_v34 = vsel %vm4080_vm3, %v4035_v20, 0.0  ;;  %v2083_v62 = vadd.f32 %v2051_v21, %v2013_v8  ;;  %v1446_v12 = vadd.f32 %v1414_v44, %v1314_v11 }
 0x193   : > { %vm4134_vm4 = vcmp.ge.s32.totalorder %v4932_v63, 1  ;;  %v1607_v53 = vmul.f32 %v3382_v9, %v1571_v34  ;;  %v1610_v41 = vmul.f32 %v3382_v9, %v4127_v17  ;;  %v4936_v35 = vand.u32 15, %v4935_v27  ;;  %2887 = vmatmul.mubr.bf16.gmra.mrb[4].mxu1 %v2312_v10  ;;  %v4182_v63 = vld [vmem:[#allocation2 + $0xa7] sm:$0xff] }
 0x194   : > { %v1779_v1 = vmul.f32 %v3408_v28, %v4048_v50  ;;  %v1880_v20 = vmul.f32 %v3428_v37, %v4061_v46  ;;  %v2184_v5 = vadd.f32 %v2152_v51, %v2082_v7  ;;  %v1708_v23 = vmul.f32 %v3426_v36, %v1672_v60  ;;  %v1380_v10 = vld [vmem:[#allocation2 + $0xa8] sm:$0xff] }
 0x195   : > { %vm4147_vm5 = vcmp.le.s32.totalorder %v4936_v35, 14  ;;  %v2185_v15 = vadd.f32 %v2153_v32, %v2083_v62  ;;  %v4156_v49 = vadd.f32 %v1415_v58, %v1315_v56  ;;  %v1639_v21 = vadd.f32 %v1607_v53, %v4019_v30  ;;  %v4186_v62 = vld [vmem:[#allocation2 + $0xb0] sm:$0xff] }
 0x196   : > { %v1674_v33 = vsel %vm3990_vm15, %v4113_v14, 0.0  ;;  %v2223_v42 = vadd.f32 %v3684_v45, %v2184_v5  ;;  %v4164_v13 = vmul.f32 %v3426_v36, %v1183_v57  ;;  %v1740_v50 = vadd.f32 %v1708_v23, %v4025_v22 }
 0x197   : > { %v1845_v46 = vsel %vm4080_vm3, %v4105_v4, 0.0  ;;  %v2224_v60 = vadd.f32 %v3684_v45, %v2185_v15  ;;  %v4171_v51 = vadd.f32 %v1610_v41, %v1446_v12  ;;  %v1741_v30 = vadd.f32 %v1709_v18, %v1639_v21  ;;  %v1185_v18 = vld [vmem:[#allocation2 + $0xaf] sm:$0xff] }
 0x198   : > { %v1881_v40 = vmul.f32 %v3428_v37, %v1845_v46  ;;  %v2255_v25 = vmax.f32 %v2223_v42, 0.0  ;;  %v1780_v56 = vmul.f32 %v3408_v28, %v1378_v48  ;;  %v1810_v8 = vadd.f32 %v1778_v24, %v1740_v50  ;;  %v4206_v15 = vld [vmem:[#allocation2 + $0xa9] sm:$0xff] }
 0x199   : > { %v1946_v22 = vsel %vm3918_vm13, %v4113_v14, 0.0  ;;  %v2256_v11 = vmax.f32 %v2224_v60, 0.0  ;;  %v1781_v44 = vmul.f32 %v3408_v28, %v1379_v16  ;;  %v1811_v58 = vadd.f32 %v1779_v1, %v1741_v30  ;;  %v4943_v60 = vld [vmem:[#allocation18_spill] sm:$0xff] }
 0x19a   : > { %v1983_v52 = vmul.f32 %v3430_v38, %v1183_v57  ;;  %v2287_v7 = vmin.f32 %v2255_v25, 6.0  ;;  %v1912_v32 = vadd.f32 %v1880_v20, %v1810_v8  ;;  %v1982_v34 = vmul.f32 %v3430_v38, %v1946_v22 }
 0x19b   : > { %v2052_v24 = vmul.f32 %v3432_v39, %v1378_v48  ;;  %v2288_v59 = vmin.f32 %v2256_v11, 6.0  ;;  %v1913_v14 = vadd.f32 %v1881_v40, %v1811_v58  ;;  %v2053_v12 = vmul.f32 %v3432_v39, %v1379_v16  ;;  %v4939_v48 = vld [vmem:[#allocation19_spill] sm:$0xff] }
 0x19c   : > { %v2119_v57 = vsel %vm4080_vm3, %v4174_v19, 0.0  ;;  %v2014_v53 = vadd.f32 %v1982_v34, %v1912_v32  ;;  %v1280_v41 = vsel %vm4134_vm4, %v4182_v63, 0.0  ;;  %v1317_v27 = vmul.f32 %v3373_v3, %v1185_v18 }
 0x19d   : > { %v1416_v35 = vmul.f32 %v3378_v6, %v1380_v10  ;;  %v4940_v1 = vand.u32 15, %v4939_v48  ;;  %v2313_v16 = vpack.c.bf16 %v2288_v59, %v2287_v7  ;;  %v2015_v5 = vadd.f32 %v1983_v52, %v1913_v14 }
 0x19e   : > { %v1316_v0 = vmul.f32 %v3373_v3, %v1280_v41  ;;  %v1417_v23 = vmul.f32 %v3378_v6, %v4186_v62  ;;  %v1882_v21 = vmul.f32 %v3428_v37, %v4127_v17  ;;  %v2084_v42 = vadd.f32 %v2052_v24, %v2014_v53 }
 0x19f   : > { %vm4199_vm6 = vcmp.ge.s32.totalorder %v4940_v1, 1  ;;  %v2154_v50 = vmul.f32 %v3629_v54, %v4127_v17  ;;  %v1573_v46 = vsel %vm4147_vm5, %v4105_v4, 0.0  ;;  %v4944_v30 = vand.u32 15, %v4943_v60  ;;  %2890 = vmatprep.mubr.bf16.mxu1 %v2313_v16  ;;  %v4250_v1 = vld [vmem:[#allocation2 + $0xb7] sm:$0xff] }
 0x1a0   : > { %v2085_v25 = vadd.f32 %v2053_v12, %v2015_v5  ;;  %v2155_v8 = vmul.f32 %v3629_v54, %v2119_v57  ;;  %v1448_v22 = vadd.f32 %v1416_v35, %v1316_v0  ;;  %v1609_v11 = vmul.f32 %v3382_v9, %v1573_v46 }
 0x1a1   : > { %vm4217_vm7 = vcmp.le.s32.totalorder %v4944_v30, 14  ;;  %v2186_v58 = vadd.f32 %v2154_v50, %v2084_v42  ;;  %v1612_v17 = vmul.f32 %v3382_v9, %v4206_v15  ;;  %v1676_v4 = vsel %vm4065_vm2, %v4182_v63, 0.0 }
 0x1a2   : > { %v1710_v52 = vmul.f32 %v3426_v36, %v1674_v33  ;;  %v2187_v7 = vadd.f32 %v2155_v8, %v2085_v25  ;;  %v4229_v32 = vadd.f32 %v1417_v23, %v1317_v27  ;;  %v1641_v34 = vadd.f32 %v1609_v11, %v4089_v31  ;;  %v4240_v33 = vld [vmem:[#allocation2 + $0xb1] sm:$0xff]  ;;  %v1187_v23 = vld [vmem:[#allocation2 + $0xbf] sm:$0xff] }
 0x1a3   : > { %v1713_v54 = vmul.f32 %v3426_v36, %v1185_v18  ;;  %v2225_v24 = vadd.f32 %v3684_v45, %v2186_v58  ;;  %v1782_v14 = vmul.f32 %v3408_v28, %v1380_v10  ;;  %v1847_v12 = vsel %vm4147_vm5, %v4174_v19, 0.0 }
 0x1a4   : > { %v1742_v59 = vadd.f32 %v1710_v52, %v4101_v55  ;;  %v2226_v57 = vadd.f32 %v3684_v45, %v2187_v7  ;;  %v4242_v53 = vadd.f32 %v1612_v17, %v1448_v22  ;;  %v1743_v31 = vadd.f32 %v4164_v13, %v1641_v34  ;;  %v1382_v13 = vld [vmem:[#allocation2 + $0xb8] sm:$0xff] }
 0x1a5   : > { %v1948_v41 = vsel %vm3990_vm15, %v4182_v63, 0.0  ;;  %v2257_v27 = vmax.f32 %v2225_v24, 0.0  ;;  %v1883_v35 = vmul.f32 %v3428_v37, %v1847_v12  ;;  %v1985_v5 = vmul.f32 %v3430_v38, %v1185_v18  ;;  %v1383_v63 = vld [vmem:[#allocation2 + $0xc0] sm:$0xff] }
 0x1a6   : > { %v1812_v55 = vadd.f32 %v1780_v56, %v1742_v59  ;;  %v1984_v48 = vmul.f32 %v3430_v38, %v1948_v41  ;;  %v2258_v16 = vmax.f32 %v2226_v57, 0.0  ;;  %v1813_v45 = vadd.f32 %v1781_v44, %v1743_v31  ;;  %v4262_v44 = vld [vmem:[%s4824_s3 + $0x8] ss:$0 sm:$0xff] }
 0x1a7   : > { %v2054_v0 = vmul.f32 %v3432_v39, %v1380_v10  ;;  %v2289_v42 = vmin.f32 %v2257_v27, 6.0  ;;  %v2055_v29 = vmul.f32 %v3432_v39, %v4186_v62  ;;  %v2121_v56 = vsel %vm4147_vm5, %v4240_v33, 0.0 }
 0x1a8   : > { %v1914_v50 = vadd.f32 %v1882_v21, %v1812_v55  ;;  %v2290_v46 = vmin.f32 %v2258_v16, 6.0  ;;  %v1915_v60 = vadd.f32 %v1883_v35, %v1813_v45  ;;  %v2156_v18 = vmul.f32 %v4262_v44, %v4206_v15  ;;  %v1482_v21 = vld [vmem:[#allocation2 + $0xb9] sm:$0xff] }
 0x1a9   : > { %v1282_v10 = vsel %vm4199_vm6, %v4250_v1, 0.0  ;;  %v1319_v25 = vmul.f32 %v3373_v3, %v1187_v23  ;;  %v1418_v8 = vmul.f32 %v3378_v6, %v1382_v13  ;;  %v1419_v58 = vmul.f32 %v3378_v6, %v1383_v63 }
 0x1aa   : > { %v2016_v30 = vadd.f32 %v1984_v48, %v1914_v50  ;;  %v1318_v47 = vmul.f32 %v3373_v3, %v1282_v10  ;;  %v2314_v22 = vpack.c.bf16 %v2290_v46, %v2289_v42  ;;  %v2017_v11 = vadd.f32 %v1985_v5, %v1915_v60  ;;  %v4306_v42 = vld [vmem:[#allocation2 + $0xc1] sm:$0xff] }
 0x1ab   : > { %v1575_v17 = vsel %vm4217_vm7, %v4174_v19, 0.0  ;;  %v1614_v24 = vmul.f32 %v3382_v9, %v1482_v21  ;;  %v1783_v59 = vmul.f32 %v3408_v28, %v4186_v62  ;;  %v2157_v57 = vmul.f32 %v4262_v44, %v2121_v56 }
 0x1ac   : > { %v2086_v52 = vadd.f32 %v2054_v0, %v2016_v30  ;;  %v1450_v7 = vadd.f32 %v1418_v8, %v1318_v47  ;;  %v1611_v34 = vmul.f32 %v3382_v9, %v1575_v17  ;;  %2891 = vmatmul.mubr.bf16.gmra.mrb[8].mxu1 %v2314_v22  ;;  %v2087_v12 = vadd.f32 %v2055_v29, %v2017_v11 }
 0x1ad   : > { %v1712_v31 = vmul.f32 %v3426_v36, %v1676_v4  ;;  %v1884_v41 = vmul.f32 %v3428_v37, %v4206_v15  ;;  %v4284_v19 = vadd.f32 %v1419_v58, %v1319_v25  ;;  %v1678_v62 = vsel %vm4134_vm4, %v4250_v1, 0.0  ;;  %v4296_v4 = vld [vmem:[%s4825_s4] ss:$0 sm:$0xff]  ;;  %v4947_v58 = vld [vmem:[#allocation9_spill] sm:$0xff] }
 0x1ae   : > { %v2188_v27 = vadd.f32 %v2156_v18, %v2086_v52  ;;  %v1643_v55 = vadd.f32 %v1611_v34, %v4156_v49  ;;  %v2189_v35 = vadd.f32 %v2157_v57, %v2087_v12  ;;  %v4287_v48 = vadd.f32 %v1614_v24, %v1450_v7  ;;  %v1189_v52 = vld [vmem:[#allocation2 + $0xcf] sm:$0xff] }
 0x1af   : > { %v1744_v16 = vadd.f32 %v1712_v31, %v4171_v51  ;;  %v4300_v45 = vmul.f32 %v3426_v36, %v1187_v23  ;;  %v1849_v5 = vsel %vm4217_vm7, %v4240_v33, 0.0  ;;  %v1950_v29 = vsel %vm4065_vm2, %v4250_v1, 0.0  ;;  %v1385_v7 = vld [vmem:[#allocation2 + $0xd0] sm:$0xff]  ;;  %v4948_v12 = vld [vmem:[#allocation20_spill] sm:$0xff] }
 0x1b0   : > { %v2227_v15 = vadd.f32 %v4296_v4, %v2188_v27  ;;  %v1745_v49 = vadd.f32 %v1713_v54, %v1643_v55  ;;  %v2228_v0 = vadd.f32 %v4296_v4, %v2189_v35  ;;  %v1885_v50 = vmul.f32 %v3428_v37, %v1849_v5  ;;  %v1384_v57 = vld [vmem:[#allocation2 + $0xc8] sm:$0xff] }
 0x1b1   : > { %v1814_v51 = vadd.f32 %v1782_v14, %v1744_v16  ;;  %v1784_v46 = vmul.f32 %v3408_v28, %v1382_v13  ;;  %v1785_v54 = vmul.f32 %v3408_v28, %v1383_v63  ;;  %v1886_v10 = vmul.f32 %v3428_v37, %v1482_v21  ;;  %v4326_v27 = vld [vmem:[#allocation2 + $0xc7] sm:$0xff] }
 0x1b2   : > { %v2259_v56 = vmax.f32 %v2227_v15, 0.0  ;;  %v1815_v60 = vadd.f32 %v1783_v59, %v1745_v49  ;;  %v2260_v18 = vmax.f32 %v2228_v0, 0.0  ;;  %v1986_v47 = vmul.f32 %v3430_v38, %v1950_v29 }
 0x1b3   : > { %v1916_v30 = vadd.f32 %v1884_v41, %v1814_v51  ;;  %v1987_v14 = vmul.f32 %v3430_v38, %v1187_v23  ;;  %v2056_v8 = vmul.f32 %v3432_v39, %v1382_v13  ;;  %v2123_v2 = vsel %vm4217_vm7, %v4306_v42, 0.0 }
 0x1b4   : > { %v1917_v25 = vadd.f32 %v1885_v50, %v1815_v60  ;;  %v2291_v1 = vmin.f32 %v2259_v56, 6.0  ;;  %v2292_v22 = vmin.f32 %v2260_v18, 6.0  ;;  %v706_v17 = vadd.s32 192, %v4947_v58 }
 0x1b5   : > { %v2018_v11 = vadd.f32 %v1986_v47, %v1916_v30  ;;  %v2057_v24 = vmul.f32 %v3432_v39, %v1383_v63  ;;  %v2158_v59 = vmul.f32 %v4262_v44, %v1482_v21  ;;  %v865_v23 = vand.u32 15, %v4948_v12  ;;  %v1484_v21 = vld [vmem:[#allocation2 + $0xc9] sm:$0xff] }
 0x1b6   : > { %v2019_v34 = vadd.f32 %v1987_v14, %v1917_v25  ;;  %v2315_v13 = vpack.c.bf16 %v2292_v22, %v2291_v1  ;;  %v2159_v40 = vmul.f32 %v4262_v44, %v2123_v2  ;;  %v886_v41 = vand.u32 15, %v706_v17  ;;  %v4364_v17 = vld [vmem:[#allocation2 + $0xd1] sm:$0xff] }
 0x1b7   : > { %v2088_v31 = vadd.f32 %v2056_v8, %v2018_v11  ;;  %vm4328_vm8 = vcmp.le.s32.totalorder %v865_v23, 14  ;;  %v1321_v16 = vmul.f32 %v3373_v3, %v1189_v52  ;;  %v1421_v63 = vmul.f32 %v3378_v6, %v1385_v7 }
 0x1b8   : > { %v2089_v55 = vadd.f32 %v2057_v24, %v2019_v34  ;;  %2894 = vmatprep.mubr.bf16.mxu1 %v2315_v13  ;;  %vm4334_vm9 = vcmp.ge.s32.totalorder %v886_v41, 1  ;;  %v1420_v5 = vmul.f32 %v3378_v6, %v1384_v57  ;;  %v1577_v0 = vsel %vm4328_vm8, %v4240_v33, 0.0 }
 0x1b9   : > { %v2190_v15 = vadd.f32 %v2158_v59, %v2088_v31  ;;  %v1284_v50 = vsel %vm4334_vm9, %v4326_v27, 0.0  ;;  %v1613_v29 = vmul.f32 %v3382_v9, %v1577_v0  ;;  %v1714_v56 = vmul.f32 %v3426_v36, %v1678_v62 }
 0x1ba   : > { %v2191_v51 = vadd.f32 %v2159_v40, %v2089_v55  ;;  %v1320_v18 = vmul.f32 %v3373_v3, %v1284_v50  ;;  %v1616_v30 = vmul.f32 %v3382_v9, %v1484_v21  ;;  %v1680_v47 = vsel %vm4199_vm6, %v4326_v27, 0.0 }
 0x1bb   : > { %v2229_v60 = vadd.f32 %v4296_v4, %v2190_v15  ;;  %v4354_v25 = vadd.f32 %v1421_v63, %v1321_v16  ;;  %v1645_v14 = vadd.f32 %v1613_v29, %v4229_v32  ;;  %v1746_v8 = vadd.f32 %v1714_v56, %v4242_v53  ;;  %v1191_v63 = vld [vmem:[#allocation2 + $0xdf] sm:$0xff] }
 0x1bc   : > { %v2230_v33 = vadd.f32 %v4296_v4, %v2191_v51  ;;  %v1452_v62 = vadd.f32 %v1420_v5, %v1320_v18  ;;  %v4359_v1 = vmul.f32 %v3426_v36, %v1189_v52  ;;  %v1851_v22 = vsel %vm4328_vm8, %v4306_v42, 0.0 }
 0x1bd   : > { %v2261_v2 = vmax.f32 %v2229_v60, 0.0  ;;  %v1747_v34 = vadd.f32 %v4300_v45, %v1645_v14  ;;  %v1786_v24 = vmul.f32 %v3408_v28, %v1384_v57  ;;  %v1816_v59 = vadd.f32 %v1784_v46, %v1746_v8  ;;  %v4389_v60 = vld [vmem:[#allocation2 + $0xd7] sm:$0xff] }
 0x1be   : > { %v2262_v11 = vmax.f32 %v2230_v33, 0.0  ;;  %v4369_v53 = vmul.f32 %v3408_v28, %v1385_v7  ;;  %v1887_v12 = vmul.f32 %v3428_v37, %v1851_v22  ;;  %v1952_v23 = vsel %vm4134_vm4, %v4326_v27, 0.0 }
 0x1bf   : > { %v2293_v32 = vmin.f32 %v2261_v2, 6.0  ;;  %v1817_v31 = vadd.f32 %v1785_v54, %v1747_v34  ;;  %v1918_v40 = vadd.f32 %v1886_v10, %v1816_v59  ;;  %v1988_v41 = vmul.f32 %v3430_v38, %v1952_v23  ;;  %v1386_v54 = vld [vmem:[#allocation2 + $0xd8] sm:$0xff] }
 0x1c0   : > { %v2294_v13 = vmin.f32 %v2262_v11, 6.0  ;;  %v4376_v55 = vadd.f32 %v1616_v30, %v1452_v62  ;;  %v1888_v45 = vmul.f32 %v3428_v37, %v1484_v21  ;;  %v1989_v46 = vmul.f32 %v3430_v38, %v1189_v52  ;;  %v1486_v52 = vld [vmem:[#allocation2 + $0xd9] sm:$0xff] }
 0x1c1   : > { %v2125_v16 = vsel %vm4328_vm8, %v4364_v17, 0.0  ;;  %v1919_v5 = vadd.f32 %v1887_v12, %v1817_v31  ;;  %v2020_v26 = vadd.f32 %v1988_v41, %v1918_v40  ;;  %v2058_v27 = vmul.f32 %v3432_v39, %v1384_v57 }
 0x1c2   : > { %v2316_v15 = vpack.c.bf16 %v2294_v13, %v2293_v32  ;;  %v2059_v10 = vmul.f32 %v3432_v39, %v1385_v7  ;;  %v2160_v0 = vmul.f32 %v4262_v44, %v1484_v21  ;;  %v705_v51 = vadd.s32 184, %v4947_v58 }
 0x1c3   : > { %v708_v50 = vadd.s32 208, %v4947_v58  ;;  %v2021_v29 = vadd.f32 %v1989_v46, %v1919_v5  ;;  %v2090_v35 = vadd.f32 %v2058_v27, %v2020_v26  ;;  %v2161_v56 = vmul.f32 %v4262_v44, %v2125_v16  ;;  %v4427_v5 = vld [vmem:[#allocation2 + $0xe1] sm:$0xff] }
 0x1c4   : > { %2895 = vmatmul.mubr.bf16.gmra.mrb[12].mxu1 %v2316_v15  ;;  %v1323_v18 = vmul.f32 %v3373_v3, %v1191_v63  ;;  %v879_v57 = vand.u32 15, %v705_v51  ;;  %v1422_v7 = vmul.f32 %v3378_v6, %v1386_v54  ;;  %v1716_v21 = vmul.f32 %v3426_v36, %v1680_v47 }
 0x1c5   : > { %v900_v30 = vand.u32 15, %v708_v50  ;;  %v2091_v33 = vadd.f32 %v2059_v10, %v2021_v29  ;;  %v2192_v14 = vadd.f32 %v2160_v0, %v2090_v35  ;;  %v1423_v8 = vmul.f32 %v3378_v6, %v3874_v61 }
 0x1c6   : > { %v1618_v2 = vmul.f32 %v3382_v9, %v1486_v52  ;;  %vm4401_vm11 = vcmp.le.s32.totalorder %v879_v57, 14  ;;  %v1682_v11 = vsel %vm4334_vm9, %v4389_v60, 0.0  ;;  %v1748_v47 = vadd.f32 %v1716_v21, %v4287_v48  ;;  %v1389_v21 = vld [vmem:[#allocation2 + $0xf0] sm:$0xff] }
 0x1c7   : > { %vm4397_vm10 = vcmp.ge.s32.totalorder %v900_v30, 1  ;;  %v2193_v34 = vadd.f32 %v2161_v56, %v2091_v33  ;;  %v2231_v59 = vadd.f32 %v4296_v4, %v2192_v14  ;;  %v1579_v12 = vsel %vm4401_vm11, %v4306_v42, 0.0 }
 0x1c8   : > { %v1286_v32 = vsel %vm4397_vm10, %v4389_v60, 0.0  ;;  %v4417_v13 = vadd.f32 %v1423_v8, %v1323_v18  ;;  %v1615_v31 = vmul.f32 %v3382_v9, %v1579_v12  ;;  %v1818_v40 = vadd.f32 %v1786_v24, %v1748_v47 }
 0x1c9   : > { %v1322_v23 = vmul.f32 %v3373_v3, %v1286_v32  ;;  %v2232_v48 = vadd.f32 %v4296_v4, %v2193_v34  ;;  %v2263_v41 = vmax.f32 %v2231_v59, 0.0  ;;  %v4422_v46 = vmul.f32 %v3426_v36, %v1191_v63  ;;  %v1488_v59 = vld [vmem:[#allocation2 + $0xe9] sm:$0xff] }
 0x1ca   : > { %v1853_v16 = vsel %vm4401_vm11, %v4364_v17, 0.0  ;;  %v1647_v42 = vadd.f32 %v1615_v31, %v4284_v19  ;;  %v1788_v26 = vmul.f32 %v3408_v28, %v1386_v54  ;;  %v1920_v27 = vadd.f32 %v1888_v45, %v1818_v40  ;;  %v4456_v32 = vld [vmem:[#allocation2 + $0xe7] sm:$0xff] }
 0x1cb   : > { %v1454_v15 = vadd.f32 %v1422_v7, %v1322_v23  ;;  %v2264_v10 = vmax.f32 %v2232_v48, 0.0  ;;  %v4433_v24 = vmul.f32 %v3408_v28, %v3874_v61  ;;  %v1890_v0 = vmul.f32 %v3428_v37, %v1486_v52  ;;  %v1193_v7 = vld [vmem:[#allocation2 + $0xef] sm:$0xff] }
 0x1cc   : > { %v1954_v51 = vsel %vm4199_vm6, %v4389_v60, 0.0  ;;  %v2295_v50 = vmin.f32 %v2263_v41, 6.0  ;;  %v1749_v29 = vadd.f32 %v4359_v1, %v1647_v42  ;;  %v1889_v35 = vmul.f32 %v3428_v37, %v1853_v16 }
 0x1cd   : > { %v1990_v19 = vmul.f32 %v3430_v38, %v1954_v51  ;;  %v2296_v56 = vmin.f32 %v2264_v10, 6.0  ;;  %v4442_v45 = vadd.f32 %v1618_v2, %v1454_v15  ;;  %v1991_v18 = vmul.f32 %v3430_v38, %v1191_v63  ;;  %v1388_v2 = vld [vmem:[#allocation2 + $0xe8] sm:$0xff] }
 0x1ce   : > { %v2127_v57 = vsel %vm4401_vm11, %v4427_v5, 0.0  ;;  %v1819_v30 = vadd.f32 %v4369_v53, %v1749_v29  ;;  %v2060_v60 = vmul.f32 %v3432_v39, %v1386_v54  ;;  %v707_v1 = vadd.s32 200, %v4947_v58 }
 0x1cf   : > { %v2022_v20 = vadd.f32 %v1990_v19, %v1920_v27  ;;  %v2317_v33 = vpack.c.bf16 %v2296_v56, %v2295_v50  ;;  %v2061_v14 = vmul.f32 %v3432_v39, %v3874_v61  ;;  %v2162_v8 = vmul.f32 %v4262_v44, %v1486_v52 }
 0x1d0   : > { %v710_v63 = vadd.s32 224, %v4947_v58  ;;  %v1921_v22 = vadd.f32 %v1889_v35, %v1819_v30  ;;  %v2163_v53 = vmul.f32 %v4262_v44, %v2127_v57  ;;  %v893_v34 = vand.u32 15, %v707_v1  ;;  %v4490_v30 = vld [vmem:[#allocation2 + $0xf1] sm:$0xff] }
 0x1d1   : > { %v2092_v47 = vadd.f32 %v2060_v60, %v2022_v20  ;;  %2898 = vmatprep.mubr.bf16.mxu1 %v2317_v33  ;;  %v1325_v12 = vmul.f32 %v3373_v3, %v1193_v7  ;;  %v1425_v23 = vmul.f32 %v3378_v6, %v1389_v21  ;;  %v1718_v61 = vmul.f32 %v3426_v36, %v1682_v11 }
 0x1d2   : > { %v914_v54 = vand.u32 15, %v710_v63  ;;  %v2023_v52 = vadd.f32 %v1991_v18, %v1921_v22  ;;  %vm4461_vm12 = vcmp.le.s32.totalorder %v893_v34, 14  ;;  %v1424_v48 = vmul.f32 %v3378_v6, %v1388_v2 }
 0x1d3   : > { %v2194_v31 = vadd.f32 %v2162_v8, %v2092_v47  ;;  %v1581_v16 = vsel %vm4461_vm12, %v4364_v17, 0.0  ;;  %v1620_v15 = vmul.f32 %v3382_v9, %v1488_v59  ;;  %v1750_v11 = vadd.f32 %v1718_v61, %v4376_v55 }
 0x1d4   : > { %vm4466_vm13 = vcmp.ge.s32.totalorder %v914_v54, 1  ;;  %v2093_v42 = vadd.f32 %v2061_v14, %v2023_v52  ;;  %v1617_v51 = vmul.f32 %v3382_v9, %v1581_v16  ;;  %v4481_v29 = vadd.f32 %v1425_v23, %v1325_v12  ;;  %v1195_v23 = vld [vmem:[#allocation2 + $0xff] sm:$0xff] }
 0x1d5   : > { %v2233_v27 = vadd.f32 %v4296_v4, %v2194_v31  ;;  %v1288_v10 = vsel %vm4466_vm13, %v4456_v32, 0.0  ;;  %v1684_v17 = vsel %vm4397_vm10, %v4456_v32, 0.0  ;;  %v1820_v35 = vadd.f32 %v1788_v26, %v1750_v11  ;;  %v1390_v16 = vld [vmem:[#allocation2 + $0xf8] sm:$0xff] }
 0x1d6   : > { %v1324_v50 = vmul.f32 %v3373_v3, %v1288_v10  ;;  %v2195_v19 = vadd.f32 %v2163_v53, %v2093_v42  ;;  %v1649_v56 = vadd.f32 %v1617_v51, %v4354_v25  ;;  %v1855_v18 = vsel %vm4461_vm12, %v4427_v5, 0.0  ;;  %v1490_v51 = vld [vmem:[#allocation2 + $0xf9] sm:$0xff] }
 0x1d7   : > { %v2265_v55 = vmax.f32 %v2233_v27, 0.0  ;;  %v1721_v20 = vmul.f32 %v3426_v36, %v1193_v7  ;;  %v1790_v60 = vmul.f32 %v3408_v28, %v1388_v2  ;;  %v1922_v1 = vadd.f32 %v1890_v0, %v1820_v35 }
 0x1d8   : > { %v1456_v57 = vadd.f32 %v1424_v48, %v1324_v50  ;;  %v2234_v33 = vadd.f32 %v4296_v4, %v2195_v19  ;;  %v1751_v26 = vadd.f32 %v4422_v46, %v1649_v56  ;;  %v4497_v14 = vmul.f32 %v3408_v28, %v1389_v21 }
 0x1d9   : > { %v1956_v25 = vsel %vm4334_vm9, %v4456_v32, 0.0  ;;  %v2297_v8 = vmin.f32 %v2265_v55, 6.0  ;;  %v1891_v63 = vmul.f32 %v3428_v37, %v1855_v18  ;;  %v1892_v22 = vmul.f32 %v3428_v37, %v1488_v59 }
 0x1da   : > { %v1992_v47 = vmul.f32 %v3430_v38, %v1956_v25  ;;  %v2266_v53 = vmax.f32 %v2234_v33, 0.0  ;;  %v4505_v0 = vadd.f32 %v1620_v15, %v1456_v57  ;;  %v1821_v34 = vadd.f32 %v4433_v24, %v1751_v26 }
 0x1db   : > { %v2129_v46 = vsel %vm4461_vm12, %v4490_v30, 0.0  ;;  %v1993_v54 = vmul.f32 %v3430_v38, %v1193_v7  ;;  %v2062_v32 = vmul.f32 %v3432_v39, %v1388_v2  ;;  %v709_v12 = vadd.s32 216, %v4947_v58  ;;  %v1194_v2 = vld [vmem:[#allocation2 + $0xf7] sm:$0xff] }
 0x1dc   : > { %v2024_v49 = vadd.f32 %v1992_v47, %v1922_v1  ;;  %v2298_v61 = vmin.f32 %v2266_v53, 6.0  ;;  %v1923_v52 = vadd.f32 %v1891_v63, %v1821_v34  ;;  %v2063_v31 = vmul.f32 %v3432_v39, %v1389_v21 }
 0x1dd   : > { %v712_v48 = vadd.s32 240, %v4947_v58  ;;  %v2164_v15 = vmul.f32 %v4262_v44, %v1488_v59  ;;  %v2165_v40 = vmul.f32 %v4262_v44, %v2129_v46  ;;  %v907_v11 = vand.u32 15, %v709_v12 }
 0x1de   : > { %v2094_v24 = vadd.f32 %v2062_v32, %v2024_v49  ;;  %v2318_v7 = vpack.c.bf16 %v2298_v61, %v2297_v8  ;;  %v2025_v42 = vadd.f32 %v1993_v54, %v1923_v52  ;;  %v1327_v10 = vmul.f32 %v3373_v3, %v1195_v23  ;;  %v1491_v49 = vld [vmem:[#allocation2 + $0x101] sm:$0xff] }
 0x1df   : > { %v928_v27 = vand.u32 15, %v712_v48  ;;  %vm4519_vm14 = vcmp.le.s32.totalorder %v907_v11, 14  ;;  %v1426_v21 = vmul.f32 %v3378_v6, %v1390_v16  ;;  %v1427_v59 = vmul.f32 %v3378_v6, %v4005_v43 }
 0x1e0   : > { %v2196_v50 = vadd.f32 %v2164_v15, %v2094_v24  ;;  %2899 = vmatmul.mubr.bf16.gmra.mrb[16].mxu1 %v2318_v7  ;;  %v2095_v19 = vadd.f32 %v2063_v31, %v2025_v42  ;;  %v1583_v56 = vsel %vm4519_vm14, %v4427_v5, 0.0  ;;  %v1720_v18 = vmul.f32 %v3426_v36, %v1684_v17 }
 0x1e1   : > { %vm4526_vm15 = vcmp.ge.s32.totalorder %v928_v27, 1  ;;  %v1619_v33 = vmul.f32 %v3382_v9, %v1583_v56  ;;  %v1622_v6 = vmul.f32 %v3382_v9, %v1490_v51  ;;  %v4540_v8 = vadd.f32 %v1427_v59, %v1327_v10 }
 0x1e2   : > { %v2235_v57 = vadd.f32 %v4296_v4, %v2196_v50  ;;  %v1290_v1 = vsel %vm4526_vm15, %v1194_v2, 0.0  ;;  %v2197_v26 = vadd.f32 %v2165_v40, %v2095_v19  ;;  %v1752_v63 = vadd.f32 %v1720_v18, %v4442_v45  ;;  %v1656_v40 = vld [vmem:[#allocation2 + $0x107] sm:$0xff] }
 0x1e3   : > { %v1326_v25 = vmul.f32 %v3373_v3, %v1290_v1  ;;  %v1651_v5 = vadd.f32 %v1619_v33, %v4417_v13  ;;  %v1686_v17 = vsel %vm4466_vm13, %v1194_v2, 0.0  ;;  %v1857_v53 = vsel %vm4519_vm14, %v4490_v30, 0.0 }
 0x1e4   : > { %v2267_v47 = vmax.f32 %v2235_v57, 0.0  ;;  %v2236_v34 = vadd.f32 %v4296_v4, %v2197_v26  ;;  %v4551_v46 = vmul.f32 %v3426_v36, %v1195_v23  ;;  %v1792_v3 = vmul.f32 %v3408_v28, %v1390_v16  ;;  %v1657_v57 = vld [vmem:[#allocation2 + $0x10f] sm:$0xff] }
 0x1e5   : > { %v1822_v54 = vadd.f32 %v1790_v60, %v1752_v63  ;;  %v1753_v45 = vadd.f32 %v1721_v20, %v1651_v5  ;;  %v4556_v13 = vmul.f32 %v3408_v28, %v4005_v43  ;;  %v1893_v32 = vmul.f32 %v3428_v37, %v1857_v53  ;;  %v1829_v63 = vld [vmem:[#allocation2 + $0x111] sm:$0xff] }
 0x1e6   : > { %v1958_v12 = vsel %vm4397_vm10, %v1194_v2, 0.0  ;;  %v2268_v61 = vmax.f32 %v2236_v34, 0.0  ;;  %v1458_v52 = vadd.f32 %v1426_v21, %v1326_v25  ;;  %v2299_v24 = vmin.f32 %v2267_v47, 6.0  ;;  %v1758_v25 = vld [vmem:[#allocation2 + $0x108] sm:$0xff]  ;;  %v1759_v5 = vld [vmem:[#allocation2 + $0x110] sm:$0xff] }
 0x1e7   : > { %v1924_v31 = vadd.f32 %v1892_v22, %v1822_v54  ;;  %v1994_v48 = vmul.f32 %v3430_v38, %v1958_v12  ;;  %v1823_v15 = vadd.f32 %v4497_v14, %v1753_v45  ;;  %v1894_v60 = vmul.f32 %v3428_v37, %v1490_v51  ;;  %v1828_v45 = vld [vmem:[#allocation2 + $0x109] sm:$0xff] }
 0x1e8   : > { %v1995_v20 = vmul.f32 %v3430_v38, %v1195_v23  ;;  %v2300_v11 = vmin.f32 %v2268_v61, 6.0  ;;  %v2064_v42 = vmul.f32 %v3432_v39, %v1390_v16  ;;  %v2131_v62 = vsel %vm4519_vm14, %v1491_v49, 0.0 }
 0x1e9   : > { %v2026_v7 = vadd.f32 %v1994_v48, %v1924_v31  ;;  %v1925_v27 = vadd.f32 %v1893_v32, %v1823_v15  ;;  %v2166_v22 = vmul.f32 %v4262_v44, %v1490_v51  ;;  %v711_v2 = vadd.s32 232, %v4947_v58 }
 0x1ea   : > { %v713_v10 = vadd.s32 248, %v4947_v58  ;;  %v2319_v14 = vpack.c.bf16 %v2300_v11, %v2299_v24  ;;  %v1688_v23 = vsel %vm4526_vm15, %v1656_v40, 0.0  ;;  %v1722_v21 = vmul.f32 %v3426_v36, %v1686_v17 }
 0x1eb   : > { %v2096_v50 = vadd.f32 %v2064_v42, %v2026_v7  ;;  %v2027_v59 = vadd.f32 %v1995_v20, %v1925_v27  ;;  %v2065_v16 = vmul.f32 %v3432_v39, %v4005_v43  ;;  %v921_v35 = vand.u32 15, %v711_v2 }
 0x1ec   : > { %v935_v19 = vand.u32 15, %v713_v10  ;;  %2902 = vmatprep.mubr.bf16.mxu1 %v2319_v14  ;;  %v1654_v56 = vadd.f32 %v1622_v6, %v1458_v52  ;;  %v2167_v51 = vmul.f32 %v4262_v44, %v2131_v62  ;;  %v1754_v58 = vadd.f32 %v1722_v21, %v4505_v0  ;;  %v1930_v62 = vld [vmem:[#allocation2 + $0x117] sm:$0xff] }
 0x1ed   : > { %v2198_v18 = vadd.f32 %v2166_v22, %v2096_v50  ;;  %v2097_v1 = vadd.f32 %v2065_v16, %v2027_v59  ;;  %vm4578_vm1 = vcmp.le.s32.totalorder %v921_v35, 14  ;;  %v1724_v43 = vmul.f32 %v3426_v36, %v1688_v23  ;;  %v1931_v22 = vld [vmem:[#allocation2 + $0x11f] sm:$0xff] }
 0x1ee   : > { %vm4582_vm2 = vcmp.le.s32.totalorder %v935_v19, 14  ;;  %v1585_v47 = vsel %vm4578_vm1, %v4490_v30, 0.0  ;;  %v1824_v17 = vadd.f32 %v1792_v3, %v1754_v58  ;;  %v1725_v54 = vmul.f32 %v3426_v36, %v1657_v57  ;;  %v2103_v23 = vld [vmem:[#allocation2 + $0x121] sm:$0xff]  ;;  %v2102_v35 = vld [vmem:[#allocation2 + $0x119] sm:$0xff] }
 0x1ef   : > { %v2237_v6 = vadd.f32 %v4296_v4, %v2198_v18  ;;  %v1587_v0 = vsel %vm4582_vm2, %v1491_v49, 0.0  ;;  %v2199_v53 = vadd.f32 %v2167_v51, %v2097_v1  ;;  %v1621_v34 = vmul.f32 %v3382_v9, %v1585_v47  ;;  %v2989_v51 = vld [vmem:[#allocation2] sm:$0xff] }
 0x1f0   : > { %v1859_v32 = vsel %vm4578_vm1, %v1491_v49, 0.0  ;;  %v1623_v61 = vmul.f32 %v3382_v9, %v1587_v0  ;;  %v1794_v52 = vmul.f32 %v3408_v28, %v1758_v25  ;;  %v1861_v30 = vsel %vm4582_vm2, %v1829_v63, 0.0 }
 0x1f1   : > { %v2269_v12 = vmax.f32 %v2237_v6, 0.0  ;;  %v2238_v31 = vadd.f32 %v4296_v4, %v2199_v53  ;;  %v1653_v3 = vadd.f32 %v1621_v34, %v4481_v29  ;;  %v1795_v48 = vmul.f32 %v3408_v28, %v1759_v5 }
 0x1f2   : > { %v1926_v24 = vadd.f32 %v1894_v60, %v1824_v17  ;;  %v1895_v36 = vmul.f32 %v3428_v37, %v1859_v32  ;;  %v1896_v15 = vmul.f32 %v3428_v37, %v1828_v45  ;;  %v1897_v49 = vmul.f32 %v3428_v37, %v1861_v30 }
 0x1f3   : > { %v1960_v9 = vsel %vm4466_vm13, %v1656_v40, 0.0  ;;  %v2270_v20 = vmax.f32 %v2238_v31, 0.0  ;;  %v2301_v11 = vmin.f32 %v2269_v12, 6.0  ;;  %v1755_v7 = vadd.f32 %v4551_v46, %v1653_v3 }
 0x1f4   : > { %v1996_v42 = vmul.f32 %v3430_v38, %v1960_v9  ;;  %v1997_v29 = vmul.f32 %v3430_v38, %v1657_v57  ;;  %v2066_v28 = vmul.f32 %v3432_v39, %v1758_v25  ;;  %v1655_v60 = vadd.f32 %v1623_v61, %v4540_v8 }
 0x1f5   : > { %v1756_v27 = vadd.f32 %v1724_v43, %v1654_v56  ;;  %v2302_v2 = vmin.f32 %v2270_v20, 6.0  ;;  %v1825_v37 = vadd.f32 %v4556_v13, %v1755_v7  ;;  %v2133_v40 = vsel %vm4578_vm1, %v1829_v63, 0.0  ;;  %v2991_v20 = vld [vmem:[%s3277_s15] sm:$0xff] }
 0x1f6   : > { %v2028_v41 = vadd.f32 %v1996_v42, %v1926_v24  ;;  %v2168_v46 = vmul.f32 %v4262_v44, %v1828_v45  ;;  %v1757_v10 = vadd.f32 %v1725_v54, %v1655_v60  ;;  %v1962_v50 = vsel %vm4526_vm15, %v1930_v62, 0.0  ;;  %v2992_v62 = vld [vmem:[%s3277_s15 + $0x18] sm:$0xff] }
 0x1f7   : > { %v1826_v14 = vadd.f32 %v1794_v52, %v1756_v27  ;;  %v2320_v21 = vpack.c.bf16 %v2302_v2, %v2301_v11  ;;  %v1927_v59 = vadd.f32 %v1895_v36, %v1825_v37  ;;  %v1999_v16 = vmul.f32 %v3430_v38, %v1931_v22  ;;  %v2993_v27 = vld [vmem:[%s3277_s15 + $0x8] sm:$0xff] }
 0x1f8   : > { %v2098_v8 = vadd.f32 %v2066_v28, %v2028_v41  ;;  %v1827_v19 = vadd.f32 %v1795_v48, %v1757_v10  ;;  %v1998_v56 = vmul.f32 %v3430_v38, %v1962_v50  ;;  %v2068_v18 = vmul.f32 %v2989_v51, %v3432_v39 }
 0x1f9   : > { %v1928_v13 = vadd.f32 %v1896_v15, %v1826_v14  ;;  %2903 = vmatmul.mubr.bf16.gmra.mrb[20].mxu1 %v2320_v21  ;;  %v2029_v57 = vadd.f32 %v1997_v29, %v1927_v59  ;;  %v2067_v58 = vmul.f32 %v3432_v39, %v1759_v5  ;;  %v2135_v1 = vsel %vm4582_vm2, %v2103_v23, 0.0  ;;  %v4636_v15 = vld [vmem:[%s4827_s6] ss:$0 sm:$0xff]  ;;  %v2995_v14 = vld [vmem:[%s3277_s15 + $0x20] sm:$0xff]  ;;  %v2996_v59 = vld [vmem:[%s3277_s15 + $0x38] sm:$0xff] }
 0x1fa   : > { %v2200_v55 = vadd.f32 %v2168_v46, %v2098_v8  ;;  %v1929_v33 = vadd.f32 %v1897_v49, %v1827_v19  ;;  %v2170_v25 = vmul.f32 %v4262_v44, %v2102_v35  ;;  %v2169_v6 = vmul.f32 %v4262_v44, %v2133_v40  ;;  %v2994_v40 = vld [vmem:[%s3277_s15 + $0x30] sm:$0xff]  ;;  %v2997_v19 = vld [vmem:[%s3277_s15 + $0x28] sm:$0xff] }
 0x1fb   : > { %v2030_v43 = vadd.f32 %v1998_v56, %v1928_v13  ;;  %v2099_v63 = vadd.f32 %v2067_v58, %v2029_v57  ;;  %v2171_v17 = vmul.f32 %v4262_v44, %v2135_v1  ;;  %v2998_v57 = vld [vmem:[%s3277_s15 + $0x50] sm:$0xff]  ;;  %v2999_v1 = vld [vmem:[%s3277_s15 + $0x40] sm:$0xff] }
 0x1fc   : > { %v2239_v38 = vadd.f32 %v4296_v4, %v2200_v55  ;;  %v2031_v47 = vadd.f32 %v1999_v16, %v1929_v33 }
 0x1fd   : > { %v2100_v0 = vadd.f32 %v2068_v18, %v2030_v43  ;;  %v2201_v53 = vadd.f32 %v2169_v6, %v2099_v63  ;;  %v3000_v63 = vld [vmem:[%s3277_s15 + $0x58] sm:$0xff] }
 0x1fe   : > { %v2101_v34 = vadd.f32 %v2068_v18, %v2031_v47  ;;  %v2271_v26 = vmax.f32 %v2239_v38, 0.0 }
 0x1ff   : > { %v2202_v39 = vadd.f32 %v2170_v25, %v2100_v0  ;;  %v2240_v5 = vadd.f32 %v4296_v4, %v2201_v53  ;;  %v3001_v0 = vld [vmem:[%s3277_s15 + $0x48] sm:$0xff] }
 0x200   : > { %v2203_v54 = vadd.f32 %v2171_v17, %v2101_v34  ;;  %v2303_v52 = vmin.f32 %v2271_v26, 6.0 }
 0x201   : > { %v2241_v45 = vadd.f32 %v4296_v4, %v2202_v39  ;;  %v2272_v32 = vmax.f32 %v2240_v5, 0.0  ;;  %v3002_v5 = vld [vmem:[%s3277_s15 + $0x70] sm:$0xff] }
 0x202   : > { %v2242_v12 = vadd.f32 %v4296_v4, %v2203_v54  ;;  %v2990_v4 = vld [vmem:[%s3277_s15 + $0x10] sm:$0xff] }
 0x203   : > { %v2273_v61 = vmax.f32 %v2241_v45, 0.0  ;;  %v2304_v30 = vmin.f32 %v2272_v32, 6.0  ;;  %v3003_v45 = vld [vmem:[%s3277_s15 + $0x60] sm:$0xff] }
 0x204   : > { %v2274_v31 = vmax.f32 %v2242_v12, 0.0 }
 0x205   : > { %v2305_v44 = vmin.f32 %v2273_v61, 6.0  ;;  %v2321_v3 = vpack.c.bf16 %v2304_v30, %v2303_v52  ;;  %v3004_v52 = vld [vmem:[%s3277_s15 + $0x78] sm:$0xff] }
 0x206   : > { %v2306_v48 = vmin.f32 %v2274_v31, 6.0 }
 0x207   : > { %2906 = vmatprep.mubr.bf16.mxu1 %v2321_v3  ;;  %v3005_v3 = vld [vmem:[%s3277_s15 + $0x68] sm:$0xff] }
 0x208   : > { %v2322_v24 = vpack.c.bf16 %v2306_v48, %v2305_v44 }
 0x20a   : > { %2907 = vmatmul.mubr.bf16.gmra.mrb[24].mxu1 %v2322_v24 }
 0x223   : > { %v2880_v36 = vpop.f32.mrb[32].mxu0 }
 0x224   : > { %v2550_v49 = vadd.f32 %v2990_v4, %v2880_v36  ;;  %v2421_v9 = vpop.f32.mrb[33].mxu0 }
 0x225   : > { %v2548_v11 = vadd.f32 %v2991_v20, %v2421_v9  ;;  %v2881_v7 = vpop.f32.mrb[34].mxu0 }
 0x226   : > { %v2589_v42 = vadd.f32 %v4636_v15, %v2550_v49  ;;  %v2551_v29 = vadd.f32 %v2992_v62, %v2881_v7  ;;  %v2424_v28 = vpop.f32.mrb[35].mxu0  ;;  %v3006_v49 = vld [vmem:[%s3277_s15 + $0x90] sm:$0xff] }
 0x227   : > { %v2587_v60 = vadd.f32 %v4636_v15, %v2548_v11  ;;  %v2549_v22 = vadd.f32 %v2993_v27, %v2424_v28  ;;  %v3007_v11 = vld [vmem:[%s3277_s15 + $0x80] sm:$0xff] }
 0x228   : > { %2621 = vst.msk [vmem:[%s4646_s22 + $0x10] sm:$0xff] %vm369_vm0, %v2589_v42  ;;  %v2590_v2 = vadd.f32 %v4636_v15, %v2551_v29  ;;  %v3008_v29 = vld [vmem:[%s3277_s15 + $0x98] sm:$0xff] }
 0x229   : > { %2619 = vst.msk [vmem:[%s4646_s22] sm:$0xff] %vm369_vm0, %v2587_v60  ;;  %v2588_v37 = vadd.f32 %v4636_v15, %v2549_v22  ;;  %v3009_v22 = vld [vmem:[%s3277_s15 + $0x88] sm:$0xff] }
 0x22a   : > { %2622 = vst.msk [vmem:[%s4646_s22 + $0x18] sm:$0xff] %vm369_vm0, %v2590_v2 }
 0x22b   : > { %2620 = vst.msk [vmem:[%s4646_s22 + $0x8] sm:$0xff] %vm369_vm0, %v2588_v37 }
 0x249   : > { %v2884_v41 = vpop.f32.mrb[0].mxu1 }
 0x24a   : > { %v2554_v46 = vadd.f32 %v2994_v40, %v2884_v41  ;;  %v2437_v10 = vpop.f32.mrb[1].mxu1 }
 0x24b   : > { %v2552_v50 = vadd.f32 %v2995_v14, %v2437_v10  ;;  %v2885_v23 = vpop.f32.mrb[2].mxu1 }
 0x24c   : > { %v2593_v21 = vadd.f32 %v4636_v15, %v2554_v46  ;;  %v2555_v8 = vadd.f32 %v2996_v59, %v2885_v23  ;;  %v2440_v16 = vpop.f32.mrb[3].mxu1  ;;  %v3010_v46 = vld [vmem:[%s3277_s15 + $0xb0] sm:$0xff] }
 0x24d   : > { %v2591_v35 = vadd.f32 %v4636_v15, %v2552_v50  ;;  %v2553_v13 = vadd.f32 %v2997_v19, %v2440_v16  ;;  %v3011_v50 = vld [vmem:[%s3277_s15 + $0xa0] sm:$0xff] }
 0x24e   : > { %2625 = vst.msk [vmem:[%s4646_s22 + $0x30] sm:$0xff] %vm369_vm0, %v2593_v21  ;;  %v2594_v56 = vadd.f32 %v4636_v15, %v2555_v8  ;;  %v3012_v8 = vld [vmem:[%s3277_s15 + $0xb8] sm:$0xff] }
 0x24f   : > { %2623 = vst.msk [vmem:[%s4646_s22 + $0x20] sm:$0xff] %vm369_vm0, %v2591_v35  ;;  %v2592_v51 = vadd.f32 %v4636_v15, %v2553_v13  ;;  %v3013_v13 = vld [vmem:[%s3277_s15 + $0xa8] sm:$0xff] }
 0x250   : > { %2626 = vst.msk [vmem:[%s4646_s22 + $0x38] sm:$0xff] %vm369_vm0, %v2594_v56 }
 0x251   : > { %2624 = vst.msk [vmem:[%s4646_s22 + $0x28] sm:$0xff] %vm369_vm0, %v2592_v51 }
 0x266   : > { %v2888_v18 = vpop.f32.mrb[4].mxu1 }
 0x267   : > { %v2558_v58 = vadd.f32 %v2998_v57, %v2888_v18  ;;  %v2453_v55 = vpop.f32.mrb[5].mxu1 }
 0x268   : > { %v2556_v33 = vadd.f32 %v2999_v1, %v2453_v55  ;;  %v2889_v43 = vpop.f32.mrb[6].mxu1 }
 0x269   : > { %v2597_v25 = vadd.f32 %v4636_v15, %v2558_v58  ;;  %v2559_v6 = vadd.f32 %v3000_v63, %v2889_v43  ;;  %v2456_v38 = vpop.f32.mrb[7].mxu1  ;;  %v3014_v58 = vld [vmem:[%s3277_s15 + $0xd0] sm:$0xff] }
 0x26a   : > { %v2595_v47 = vadd.f32 %v4636_v15, %v2556_v33  ;;  %v2557_v17 = vadd.f32 %v3001_v0, %v2456_v38  ;;  %v3015_v33 = vld [vmem:[%s3277_s15 + $0xc0] sm:$0xff] }
 0x26b   : > { %2629 = vst.msk [vmem:[%s4646_s22 + $0x50] sm:$0xff] %vm369_vm0, %v2597_v25  ;;  %v2598_v53 = vadd.f32 %v4636_v15, %v2559_v6  ;;  %v3016_v6 = vld [vmem:[%s3277_s15 + $0xd8] sm:$0xff] }
 0x26c   : > { %2627 = vst.msk [vmem:[%s4646_s22 + $0x40] sm:$0xff] %vm369_vm0, %v2595_v47  ;;  %v2596_v34 = vadd.f32 %v4636_v15, %v2557_v17  ;;  %v3017_v17 = vld [vmem:[%s3277_s15 + $0xc8] sm:$0xff] }
 0x26d   : > { %2630 = vst.msk [vmem:[%s4646_s22 + $0x58] sm:$0xff] %vm369_vm0, %v2598_v53 }
 0x26e   : > { %2628 = vst.msk [vmem:[%s4646_s22 + $0x48] sm:$0xff] %vm369_vm0, %v2596_v34 }
 0x27f   : > { %v2892_v39 = vpop.f32.mrb[8].mxu1 }
 0x280   : > { %v2562_v26 = vadd.f32 %v3002_v5, %v2892_v39  ;;  %v2469_v54 = vpop.f32.mrb[9].mxu1 }
 0x281   : > { %v2560_v32 = vadd.f32 %v3003_v45, %v2469_v54  ;;  %v2893_v12 = vpop.f32.mrb[10].mxu1 }
 0x282   : > { %v2601_v61 = vadd.f32 %v4636_v15, %v2562_v26  ;;  %v2563_v30 = vadd.f32 %v3004_v52, %v2893_v12  ;;  %v2472_v31 = vpop.f32.mrb[11].mxu1  ;;  %v3018_v26 = vld [vmem:[%s3277_s15 + $0xf0] sm:$0xff] }
 0x283   : > { %v2599_v44 = vadd.f32 %v4636_v15, %v2560_v32  ;;  %v2561_v48 = vadd.f32 %v3005_v3, %v2472_v31  ;;  %v3019_v32 = vld [vmem:[%s3277_s15 + $0xe0] sm:$0xff] }
 0x284   : > { %2633 = vst.msk [vmem:[%s4646_s22 + $0x70] sm:$0xff] %vm369_vm0, %v2601_v61  ;;  %v2602_v24 = vadd.f32 %v4636_v15, %v2563_v30  ;;  %v3020_v30 = vld [vmem:[%s3277_s15 + $0xf8] sm:$0xff] }
 0x285   : > { %2631 = vst.msk [vmem:[%s4646_s22 + $0x60] sm:$0xff] %vm369_vm0, %v2599_v44  ;;  %v2600_v36 = vadd.f32 %v4636_v15, %v2561_v48  ;;  %v3021_v48 = vld [vmem:[%s3277_s15 + $0xe8] sm:$0xff]  ;;  %s2652_s15 = scalar_lea.sflag [#allocation5], %s3271_s16 }
 0x286   : > { %2634 = vst.msk [vmem:[%s4646_s22 + $0x78] sm:$0xff] %vm369_vm0, %v2602_v24 }
 0x287   : > { %2632 = vst.msk [vmem:[%s4646_s22 + $0x68] sm:$0xff] %vm369_vm0, %v2600_v36 }
 0x297   : > { %v2896_v4 = vpop.f32.mrb[12].mxu1 }
 0x298   : > { %v2566_v9 = vadd.f32 %v3006_v49, %v2896_v4  ;;  %v2485_v20 = vpop.f32.mrb[13].mxu1 }
 0x299   : > { %v2564_v7 = vadd.f32 %v3007_v11, %v2485_v20  ;;  %v2897_v42 = vpop.f32.mrb[14].mxu1 }
 0x29a   : > { %v2605_v62 = vadd.f32 %v4636_v15, %v2566_v9  ;;  %v2567_v28 = vadd.f32 %v3008_v29, %v2897_v42  ;;  %v2488_v60 = vpop.f32.mrb[15].mxu1 }
 0x29b   : > { %v2603_v27 = vadd.f32 %v4636_v15, %v2564_v7  ;;  %v2565_v2 = vadd.f32 %v3009_v22, %v2488_v60 }
 0x29c   : > { %2637 = vst.msk [vmem:[%s4646_s22 + $0x90] sm:$0xff] %vm369_vm0, %v2605_v62  ;;  %v2606_v37 = vadd.f32 %v4636_v15, %v2567_v28 }
 0x29d   : > { %2635 = vst.msk [vmem:[%s4646_s22 + $0x80] sm:$0xff] %vm369_vm0, %v2603_v27  ;;  %v2604_v41 = vadd.f32 %v4636_v15, %v2565_v2 }
 0x29e   : > { %2638 = vst.msk [vmem:[%s4646_s22 + $0x98] sm:$0xff] %vm369_vm0, %v2606_v37 }
 0x29f   : > { %2636 = vst.msk [vmem:[%s4646_s22 + $0x88] sm:$0xff] %vm369_vm0, %v2604_v41 }
 0x2b3   : > { %v2900_v40 = vpop.f32.mrb[16].mxu1 }
 0x2b4   : > { %v2570_v10 = vadd.f32 %v3010_v46, %v2900_v40  ;;  %v2501_v14 = vpop.f32.mrb[17].mxu1 }
 0x2b5   : > { %v2568_v23 = vadd.f32 %v3011_v50, %v2501_v14  ;;  %v2901_v21 = vpop.f32.mrb[18].mxu1 }
 0x2b6   : > { %v2609_v59 = vadd.f32 %v4636_v15, %v2570_v10  ;;  %v2571_v16 = vadd.f32 %v3012_v8, %v2901_v21  ;;  %v2504_v35 = vpop.f32.mrb[19].mxu1 }
 0x2b7   : > { %v2607_v19 = vadd.f32 %v4636_v15, %v2568_v23  ;;  %v2569_v56 = vadd.f32 %v3013_v13, %v2504_v35 }
 0x2b8   : > { %2641 = vst.msk [vmem:[%s4646_s22 + $0xb0] sm:$0xff] %vm369_vm0, %v2609_v59  ;;  %v2610_v51 = vadd.f32 %v4636_v15, %v2571_v16 }
 0x2b9   : > { %2639 = vst.msk [vmem:[%s4646_s22 + $0xa0] sm:$0xff] %vm369_vm0, %v2607_v19  ;;  %v2608_v18 = vadd.f32 %v4636_v15, %v2569_v56 }
 0x2ba   : > { %2642 = vst.msk [vmem:[%s4646_s22 + $0xb8] sm:$0xff] %vm369_vm0, %v2610_v51 }
 0x2bb   : > { %2640 = vst.msk [vmem:[%s4646_s22 + $0xa8] sm:$0xff] %vm369_vm0, %v2608_v18 }
 0x2cc   : > { %v2904_v57 = vpop.f32.mrb[20].mxu1 }
 0x2cd   : > { %v2574_v55 = vadd.f32 %v3014_v58, %v2904_v57  ;;  %v2517_v1 = vpop.f32.mrb[21].mxu1 }
 0x2ce   : > { %v2572_v43 = vadd.f32 %v3015_v33, %v2517_v1  ;;  %v2905_v25 = vpop.f32.mrb[22].mxu1 }
 0x2cf   : > { %v2613_v63 = vadd.f32 %v4636_v15, %v2574_v55  ;;  %v2575_v38 = vadd.f32 %v3016_v6, %v2905_v25  ;;  %v2520_v47 = vpop.f32.mrb[23].mxu1 }
 0x2d0   : > { %v2611_v0 = vadd.f32 %v4636_v15, %v2572_v43  ;;  %v2573_v53 = vadd.f32 %v3017_v17, %v2520_v47 }
 0x2d1   : > { %2645 = vst.msk [vmem:[%s4646_s22 + $0xd0] sm:$0xff] %vm369_vm0, %v2613_v63  ;;  %v2614_v34 = vadd.f32 %v4636_v15, %v2575_v38 }
 0x2d2   : > { %2643 = vst.msk [vmem:[%s4646_s22 + $0xc0] sm:$0xff] %vm369_vm0, %v2611_v0  ;;  %v2612_v39 = vadd.f32 %v4636_v15, %v2573_v53 }
 0x2d3   : > { %2646 = vst.msk [vmem:[%s4646_s22 + $0xd8] sm:$0xff] %vm369_vm0, %v2614_v34 }
 0x2d4   : > { %2644 = vst.msk [vmem:[%s4646_s22 + $0xc8] sm:$0xff] %vm369_vm0, %v2612_v39 }
 0x2dd   : > { %v2908_v5 = vpop.f32.mrb[24].mxu1 }
 0x2de   : > { %v2578_v54 = vadd.f32 %v3018_v26, %v2908_v5  ;;  %v2533_v45 = vpop.f32.mrb[25].mxu1 }
 0x2df   : > { %v2576_v12 = vadd.f32 %v3019_v32, %v2533_v45  ;;  %v2909_v61 = vpop.f32.mrb[26].mxu1 }
 0x2e0   : > { %v2617_v52 = vadd.f32 %v4636_v15, %v2578_v54  ;;  %v2579_v31 = vadd.f32 %v3020_v30, %v2909_v61  ;;  %v2536_v44 = vpop.f32.mrb[27].mxu1 }
 0x2e1   : > { %v2615_v3 = vadd.f32 %v4636_v15, %v2576_v12  ;;  %v2577_v24 = vadd.f32 %v3021_v48, %v2536_v44 }
 0x2e2   : > { %2649 = vst.msk [vmem:[%s4646_s22 + $0xf0] sm:$0xff] %vm369_vm0, %v2617_v52  ;;  %v2618_v36 = vadd.f32 %v4636_v15, %v2579_v31 }
 0x2e3   : > { %2647 = vst.msk [vmem:[%s4646_s22 + $0xe0] sm:$0xff] %vm369_vm0, %v2615_v3  ;;  %v2616_v4 = vadd.f32 %v4636_v15, %v2577_v24 }
 0x2e4   : > { %2650 = vst.msk [vmem:[%s4646_s22 + $0xf8] sm:$0xff] %vm369_vm0, %v2618_v36 }
 0x2e5   : > { %2648 = vst.msk [vmem:[%s4646_s22 + $0xe8] sm:$0xff] %vm369_vm0, %v2616_v4 }
 0x2e6   : > { %3065 = shalt.err (!%p3062_p2)
}
 0x2e7   : > { %s3066_s11 = scalar_lea.hbm %s4768_s28, 4096  ;;  %s3070_s22 = scalar_lea.hbm %s4828_s7, 8192 }
 0x2e8   : > { %p3067_p4 = scmp.ne.s32.totalorder %s4768_s28, %s3066_s11  ;;  %p3071_p9 = scmp.lt.u32.totalorder %s4768_s28, %s4828_s7 }
 0x2e9   : > { %p3072_p1 = scmp.lt.u32.totalorder %s3070_s22, %s3066_s11  ;;  %p3074_p6 = scmp.lt.u32.totalorder %s3066_s11, %s4768_s28 }
 0x2ea   : > { %p3068_p5 = pnand %p3067_p4, %p4969_p11 }
 0x2eb   : > { %p3073_p3 = por %p3072_p1, %p3071_p9 }
 0x2ec   : > { %p3069_p7 = pneg %p3068_p5 }
 0x2ed   : > { %p3075_p12 = por %p3074_p6, %p3073_p3 }
 0x2ef   : > { %p3076_p13 = pnand %p3075_p12, %p3069_p7 }
 0x2f1   : > { %3079 = shalt.err (!%p3076_p13)
}
 0x2f2   : > { %s3125_s12 = smov 128   ;;  %s3126_s19 = smov 8  }
 0x2f3   : > { %2928 = dma.vmem_to_hbm [thread:$0]  (%p4969_p11), %s4770_s23, 4096, %s4768_s28, %s2652_s15, %s3125_s12, %s3125_s12, %s3126_s19  }
 0x2f4 PF: > { %s2680_s21 = sand.u32 1, %s3106_s24   ;;  %p4970_p8 = scmp.ne.s32.totalorder %s4853_s14, 0 }
 0x2f5   : > { %p4971_p10 = scmp.ge.s32.totalorder %s3118_s27, 2  ;;  %s2681_s9 = scalar_lea.sflag [#allocation5], %s2680_s21 }
 0x2f7   : > { %p2935_p0 = pnand %p4971_p10, %p4970_p8 }
 0x2f9   : > { %3101 = dma.done.wait (!%p2935_p0), %s2681_s9, 4096  }
 0x2fa   : > { %3103 = vsyncadd (!%p2935_p0), %s2681_s9, 4294963200  ;;  %p20_p2 = scmp.ge.s32.totalorder %s3192_s30, 4   ;;  %s4972_s24 = smov %s3110_s25 }
 0x2fb   : > { %s4973_s25 = smov %s3114_s26  ;;  %s4974_s26 = smov %s3204_s10 }
 0x2fc   : > { %s4975_s27 = smov %s3192_s30  ;;  %22 = sbr.rel (!%p20_p2) target bundleno = 5 (0x5), region = 93 }
 0x303   :  { %2686 = vsyncpa [#allocation4], 1 }
 0x304   :  { %2688 = vsyncpa [#allocation4 + $0x1], 1 }
 0x305   :  { %2689 = vsyncpa [#allocation5], 1 }
 0x306   :  { %2691 = vsyncpa [#allocation5 + $0x1], 1 }

</bundles_post_ra>
